<compile_context>
chip_gen: v6e
topology: v6e:2x2x1
jax: 0.10.0
libtpu: 0.0.40
codegen_flags: <defaults>
</compile_context>

<pallas_src>
import jax
import jax.numpy as jnp
from jax.experimental import pallas as pl
from jax.experimental.pallas import tpu as pltpu

F_PAD = 128        # lane-dense feature width (all feature dims padded to 128)
_BN_EPS = 1e-5


def _make_graphnet_kernel(n_true: int, n_pad: int, tm: int):
    """Fused GraphNet kernel. n_true = real node count (BN denominator)."""
    inv_n = 1.0 / float(n_true)
    n_tiles = n_pad // tm

    def kernel(a_hbm,                                   # (N_pad,N_pad) bf16, HBM
               x_ref, mask_ref, dis_ref,
               g0_ref, be0_ref,
               w1_ref, b1_ref, g1_ref, be1_ref,
               w2r_ref, w2n_ref, b2_ref, g2_ref, be2_ref,
               w3_ref, b3_ref, w4_ref, b4_ref,
               out_ref,
               abuf, sem, ybuf, aggbuf):
        mask = mask_ref[...]                            # (N_pad, 1) f32
        dis = dis_ref[...]                              # (N_pad, 1) f32, 0 on pad rows

        def batch_norm(h, g_ref, b_ref):
            # Training-mode BatchNorm1d over the node axis, biased variance.
            # `h` has zeroed padded rows, so sums / n_true are exact stats.
            mean = jnp.sum(h, axis=0, keepdims=True) * inv_n
            msq = jnp.sum(h * h, axis=0, keepdims=True) * inv_n
            var = jnp.maximum(msq - mean * mean, 0.0)
            scale = g_ref[...] * jax.lax.rsqrt(var + _BN_EPS)   # EUP slot
            shift = b_ref[...] - mean * scale
            return (h * scale + shift) * mask           # mask kills pad-row shift

        def mm(a_bf16, w_ref):
            # bf16 x bf16 MXU matmul, f32 accumulation.
            return jnp.dot(a_bf16, w_ref[...], preferred_element_type=jnp.float32)

        def aggregate(start_slot):
            # aggbuf <- A @ ybuf, streaming (tm, n_pad) adjacency row slabs
            # from HBM with a double-buffered manual DMA pipeline.
            def fetch(t, slot):
                pltpu.make_async_copy(
                    a_hbm.at[pl.ds(t * tm, tm)], abuf.at[slot],
                    sem.at[slot]).start()

            fetch(0, start_slot)

            @pl.loop(0, n_tiles)
            def _(t):
                slot = (t + start_slot) & 1
                pltpu.make_async_copy(
                    a_hbm.at[pl.ds(0, tm)], abuf.at[slot], sem.at[slot]).wait()

                @pl.when(t + 1 < n_tiles)
                def _():
                    fetch(t + 1, 1 - slot)

                r = pl.multiple_of(t * tm, tm)
                aggbuf[pl.ds(r, tm), :] = jnp.dot(
                    abuf[slot], ybuf[...], preferred_element_type=jnp.float32)

        # ---------------- bn_0 -------------------------------------------
        xn = batch_norm(x_ref[...], g0_ref, be0_ref)    # (N_pad, F) f32

        # ---------------- gcn_1 (GCNConv) -> ReLU -> bn_1 -----------------
        #   Ahat @ (X W1) + b1 with Ahat = D^-1/2 (A+I) D^-1/2 applied as
        #   d^-1/2 * ( A @ (d^-1/2 * XW) + d^-1/2 * XW )   (no a_gcn matrix)
        xw = mm(xn.astype(jnp.bfloat16), w1_ref)        # (N_pad, F) f32
        ys = xw * dis                                   # d^-1/2 row-scale
        ybuf[...] = ys.astype(jnp.bfloat16)
        aggregate(0)
        agg = dis * (aggbuf[...] + ys)
        h = jnp.maximum(agg + b1_ref[...], 0.0) * mask
        h = batch_norm(h, g1_ref, be1_ref)

        # ---------------- gcn_2 (GraphConv) -> ReLU -> bn_2 ---------------
        #   X W_root + (A X) W_nei + b2   (A without self-loops),
        #   two K=128 matmuls instead of a (N_pad, 256) f32 concat.
        h_bf = h.astype(jnp.bfloat16)
        ybuf[...] = h_bf
        aggregate(n_tiles & 1)                          # continue slot parity
        h2 = (mm(h_bf, w2r_ref)
              + mm(aggbuf[...].astype(jnp.bfloat16), w2n_ref)
              + b2_ref[...])
        h2 = jnp.maximum(h2, 0.0) * mask
        h2 = batch_norm(h2, g2_ref, be2_ref)

        # ---------------- classifier --------------------------------------
        # TODO(synk): training-mode Dropout needs a PRNG; eval-mode dropout
        #             is the identity, which is what we implement here.
        z = h2 + xn                                     # residual (c_in == hidden)
        z = jnp.maximum(mm(z.astype(jnp.bfloat16), w3_ref) + b3_ref[...], 0.0)
        out_ref[...] = (mm(z.astype(jnp.bfloat16), w4_ref) + b4_ref[...]) * mask

    return kernel


def _round_up(v, m):
    return (v + m - 1) // m * m


def _pad2d(a, rows, cols, fill=0.0):
    return jnp.pad(a, ((0, rows - a.shape[0]), (0, cols - a.shape[1])),
                   constant_values=fill)


def build_graph_tensors(edge_index, n, n_pad):
    """Dense adjacency (bf16, padded, NO self-loops) + D^-1/2 of (A+I).

    For static graphs, call this once and pass the result via `graph=` to
    keep the O(N^2) construction out of the per-forward path.
    """
    src, dst = edge_index[0], edge_index[1]
    # TODO(synk): .max() dedups parallel edges; PyG scatter-add would count
    #             duplicate entries in edge_index.
    adj = jnp.zeros((n_pad, n_pad), jnp.bfloat16).at[dst, src].max(
        jnp.bfloat16(1.0))                               # A[dst, src], built in bf16
    deg = jnp.sum(adj[:n, :n], axis=1, dtype=jnp.float32) + 1.0   # in-deg + self
    dis = _pad2d(jax.lax.rsqrt(deg).reshape(n, 1), n_pad, 1)      # 0 on pad rows
    return adj, dis


def graphnet_forward(x, edge_index, params, n_classes, *, graph=None):
    """GraphNet forward.  x: (N, c_in) f32, edge_index: (2, E) int32 [src; dst]."""
    n, c_in = x.shape
    hidden = params["w1"].shape[1]
    assert c_in == hidden, "residual `h + bn_0(x)` requires c_in == hidden_size"

    n_pad = _round_up(n, 128)
    tm = 256 if n_pad % 256 == 0 else 128                # adjacency row-slab height
    f = F_PAD

    if graph is None:
        graph = build_graph_tensors(edge_index, n, n_pad)
    a_nei, dis = graph                                   # bf16 adjacency stays in HBM

    # ---- pad node features & parameters to 128 lanes ----------------------
    xp = _pad2d(x.astype(jnp.float32), n_pad, f)
    mask = jnp.pad(jnp.ones((n, 1), jnp.float32), ((0, n_pad - n), (0, 0)))

    def vec(v, fill=0.0):                      # (F,) param -> (1, F_PAD) f32
        return _pad2d(v.reshape(1, -1).astype(jnp.float32), 1, f, fill)

    def wmat(w):                               # (in, out) -> (F_PAD, F_PAD) bf16
        return _pad2d(w.astype(jnp.float32), f, f).astype(jnp.bfloat16)

    small = (
        xp, mask, dis,
        vec(params["bn0_g"], 1.0), vec(params["bn0_b"]),
        wmat(params["w1"]), vec(params["b1"]),
        vec(params["bn1_g"], 1.0), vec(params["bn1_b"]),
        wmat(params["w2_root"]), wmat(params["w2_nei"]), vec(params["b2"]),
        vec(params["bn2_g"], 1.0), vec(params["bn2_b"]),
        wmat(params["w3"]), vec(params["b3"]),
        wmat(params["w4"]), vec(params["b4"]),
    )

    def full_spec(shape):
        return pl.BlockSpec(shape, lambda i: (0, 0))

    out = pl.pallas_call(
        _make_graphnet_kernel(n, n_pad, tm),
        out_shape=jax.ShapeDtypeStruct((n_pad, f), jnp.float32),
        grid=(1,),
        in_specs=[pl.BlockSpec(memory_space=pl.ANY)]      # adjacency stays in HBM
                 + [full_spec(a.shape) for a in small],
        out_specs=full_spec((n_pad, f)),
        scratch_shapes=[
            pltpu.VMEM((2, tm, n_pad), jnp.bfloat16),     # adjacency double buffer
            pltpu.SemaphoreType.DMA((2,)),
            pltpu.VMEM((n_pad, f), jnp.bfloat16),         # aggregation operand
            pltpu.VMEM((n_pad, f), jnp.float32),          # aggregation result
        ],
        compiler_params=pltpu.CompilerParams(
            dimension_semantics=("arbitrary",),
            vmem_limit_bytes=64 * 1024 * 1024),
    )(a_nei, *small)

    return out[:n, :n_classes]


if __name__ == "__main__":
    N, C_IN, HIDDEN, NC = 96, 32, 32, 10     # residual requires C_IN == HIDDEN
    E = 256                                  # undirected edges (stored both ways)

    key = jax.random.PRNGKey(0)
    keys = jax.random.split(key, 12)

    x = jax.random.normal(keys[0], (N, C_IN), jnp.float32)

    # deterministic random undirected graph with no self-loops
    src = jax.random.randint(keys[1], (E,), 0, N)
    off = jax.random.randint(keys[2], (E,), 1, N)
    dst = (src + off) % N
    edge_index = jnp.stack([jnp.concatenate([src, dst]),
                            jnp.concatenate([dst, src])]).astype(jnp.int32)

    def init_w(k, fan_in, fan_out):
        return jax.random.normal(k, (fan_in, fan_out), jnp.float32) / jnp.sqrt(
            float(fan_in))

    params = {
        "bn0_g": jnp.ones((C_IN,), jnp.float32),
        "bn0_b": jnp.zeros((C_IN,), jnp.float32),
        "w1": init_w(keys[3], C_IN, HIDDEN),
        "b1": 0.01 * jax.random.normal(keys[4], (HIDDEN,), jnp.float32),
        "bn1_g": 1.0 + 0.1 * jax.random.normal(keys[5], (HIDDEN,), jnp.float32),
        "bn1_b": 0.1 * jax.random.normal(keys[6], (HIDDEN,), jnp.float32),
        "w2_root": init_w(keys[7], HIDDEN, HIDDEN),
        "w2_nei": init_w(keys[8], HIDDEN, HIDDEN),
        "b2": jnp.zeros((HIDDEN,), jnp.float32),
        "bn2_g": jnp.ones((HIDDEN,), jnp.float32),
        "bn2_b": jnp.zeros((HIDDEN,), jnp.float32),
        "w3": init_w(keys[9], HIDDEN, HIDDEN // 2),
        "b3": jnp.zeros((HIDDEN // 2,), jnp.float32),
        "w4": init_w(keys[10], HIDDEN // 2, NC),
        "b4": 0.01 * jax.random.normal(keys[11], (NC,), jnp.float32),
    }

    logits = graphnet_forward(x, edge_index, params, NC)
    logits = jax.block_until_ready(logits)
    assert logits.shape == (N, NC)
    assert bool(jnp.all(jnp.isfinite(logits)))
    print("KERNEL_OK")
</pallas_src>

<mosaic_0001>
module attributes {stable_mosaic.version = 11 : i64} {
  func.func @kernel(%arg0: i32, %arg1: memref<128x128xbf16, #tpu.memory_space<any>>, %arg2: memref<128x128xf32, #tpu.memory_space<vmem>>, %arg3: memref<128x1xf32, #tpu.memory_space<vmem>>, %arg4: memref<128x1xf32, #tpu.memory_space<vmem>>, %arg5: memref<1x128xf32, #tpu.memory_space<vmem>>, %arg6: memref<1x128xf32, #tpu.memory_space<vmem>>, %arg7: memref<128x128xbf16, #tpu.memory_space<vmem>>, %arg8: memref<1x128xf32, #tpu.memory_space<vmem>>, %arg9: memref<1x128xf32, #tpu.memory_space<vmem>>, %arg10: memref<1x128xf32, #tpu.memory_space<vmem>>, %arg11: memref<128x128xbf16, #tpu.memory_space<vmem>>, %arg12: memref<128x128xbf16, #tpu.memory_space<vmem>>, %arg13: memref<1x128xf32, #tpu.memory_space<vmem>>, %arg14: memref<1x128xf32, #tpu.memory_space<vmem>>, %arg15: memref<1x128xf32, #tpu.memory_space<vmem>>, %arg16: memref<128x128xbf16, #tpu.memory_space<vmem>>, %arg17: memref<1x128xf32, #tpu.memory_space<vmem>>, %arg18: memref<128x128xbf16, #tpu.memory_space<vmem>>, %arg19: memref<1x128xf32, #tpu.memory_space<vmem>>, %arg20: memref<128x128xf32, #tpu.memory_space<vmem>>, %arg21: memref<2x128x128xbf16, #tpu.memory_space<vmem>>, %arg22: memref<2x!tpu.dma_semaphore, #tpu.memory_space<semaphore_mem>>, %arg23: memref<128x128xbf16, #tpu.memory_space<vmem>>, %arg24: memref<128x128xf32, #tpu.memory_space<vmem>>) attributes {dimension_semantics = [#tpu.dimension_semantics<arbitrary>], iteration_bounds = array<i64: 1>, scalar_prefetch = 0 : i64, scratch_operands = 4 : i64, tpu.core_type = #tpu.core_type<tc>, window_params = [{}, {pipeline_mode = #tpu.pipeline_mode<synchronous>, transform_indices = @transform_1, window_bounds = array<i64: 128, 128>}, {pipeline_mode = #tpu.pipeline_mode<synchronous>, transform_indices = @transform_2, window_bounds = array<i64: 128, 1>}, {pipeline_mode = #tpu.pipeline_mode<synchronous>, transform_indices = @transform_3, window_bounds = array<i64: 128, 1>}, {pipeline_mode = #tpu.pipeline_mode<synchronous>, transform_indices = @transform_4, window_bounds = array<i64: 1, 128>}, {pipeline_mode = #tpu.pipeline_mode<synchronous>, transform_indices = @transform_5, window_bounds = array<i64: 1, 128>}, {pipeline_mode = #tpu.pipeline_mode<synchronous>, transform_indices = @transform_6, window_bounds = array<i64: 128, 128>}, {pipeline_mode = #tpu.pipeline_mode<synchronous>, transform_indices = @transform_7, window_bounds = array<i64: 1, 128>}, {pipeline_mode = #tpu.pipeline_mode<synchronous>, transform_indices = @transform_8, window_bounds = array<i64: 1, 128>}, {pipeline_mode = #tpu.pipeline_mode<synchronous>, transform_indices = @transform_9, window_bounds = array<i64: 1, 128>}, {pipeline_mode = #tpu.pipeline_mode<synchronous>, transform_indices = @transform_10, window_bounds = array<i64: 128, 128>}, {pipeline_mode = #tpu.pipeline_mode<synchronous>, transform_indices = @transform_11, window_bounds = array<i64: 128, 128>}, {pipeline_mode = #tpu.pipeline_mode<synchronous>, transform_indices = @transform_12, window_bounds = array<i64: 1, 128>}, {pipeline_mode = #tpu.pipeline_mode<synchronous>, transform_indices = @transform_13, window_bounds = array<i64: 1, 128>}, {pipeline_mode = #tpu.pipeline_mode<synchronous>, transform_indices = @transform_14, window_bounds = array<i64: 1, 128>}, {pipeline_mode = #tpu.pipeline_mode<synchronous>, transform_indices = @transform_15, window_bounds = array<i64: 128, 128>}, {pipeline_mode = #tpu.pipeline_mode<synchronous>, transform_indices = @transform_16, window_bounds = array<i64: 1, 128>}, {pipeline_mode = #tpu.pipeline_mode<synchronous>, transform_indices = @transform_17, window_bounds = array<i64: 128, 128>}, {pipeline_mode = #tpu.pipeline_mode<synchronous>, transform_indices = @transform_18, window_bounds = array<i64: 1, 128>}, {pipeline_mode = #tpu.pipeline_mode<synchronous>, transform_indices = @transform_19, window_bounds = array<i64: 128, 128>}]} {
    %c0 = arith.constant 0 : index
    %c0_0 = arith.constant 0 : index
    %0 = vector.load %arg3[%c0, %c0_0] : memref<128x1xf32, #tpu.memory_space<vmem>>, vector<128x1xf32>
    %c0_1 = arith.constant 0 : index
    %c0_2 = arith.constant 0 : index
    %1 = vector.load %arg4[%c0_1, %c0_2] : memref<128x1xf32, #tpu.memory_space<vmem>>, vector<128x1xf32>
    %c0_3 = arith.constant 0 : index
    %c0_4 = arith.constant 0 : index
    %2 = vector.load %arg2[%c0_3, %c0_4] : memref<128x128xf32, #tpu.memory_space<vmem>>, vector<128x128xf32>
    %cst = arith.constant dense<0.000000e+00> : vector<128xf32>
    %3 = vector.multi_reduction <add>, %2, %cst [0] : vector<128x128xf32> to vector<128xf32>
    %4 = vector.shape_cast %3 : vector<128xf32> to vector<1x128xf32>
    %cst_5 = arith.constant 0.010416667 : f32
    %5 = vector.broadcast %cst_5 : f32 to vector<1x128xf32>
    %6 = arith.mulf %4, %5 : vector<1x128xf32>
    %7 = arith.mulf %2, %2 : vector<128x128xf32>
    %cst_6 = arith.constant dense<0.000000e+00> : vector<128xf32>
    %8 = vector.multi_reduction <add>, %7, %cst_6 [0] : vector<128x128xf32> to vector<128xf32>
    %9 = vector.shape_cast %8 : vector<128xf32> to vector<1x128xf32>
    %cst_7 = arith.constant 0.010416667 : f32
    %10 = vector.broadcast %cst_7 : f32 to vector<1x128xf32>
    %11 = arith.mulf %9, %10 : vector<1x128xf32>
    %12 = arith.mulf %6, %6 : vector<1x128xf32>
    %13 = arith.subf %11, %12 : vector<1x128xf32>
    %cst_8 = arith.constant 0.000000e+00 : f32
    %14 = vector.broadcast %cst_8 : f32 to vector<1x128xf32>
    %15 = arith.maximumf %13, %14 : vector<1x128xf32>
    %c0_9 = arith.constant 0 : index
    %c0_10 = arith.constant 0 : index
    %16 = vector.load %arg5[%c0_9, %c0_10] : memref<1x128xf32, #tpu.memory_space<vmem>>, vector<1x128xf32>
    %cst_11 = arith.constant 9.99999974E-6 : f32
    %17 = vector.broadcast %cst_11 : f32 to vector<1x128xf32>
    %18 = arith.addf %15, %17 : vector<1x128xf32>
    %19 = math.rsqrt %18 : vector<1x128xf32>
    %20 = arith.mulf %16, %19 : vector<1x128xf32>
    %c0_12 = arith.constant 0 : index
    %c0_13 = arith.constant 0 : index
    %21 = vector.load %arg6[%c0_12, %c0_13] : memref<1x128xf32, #tpu.memory_space<vmem>>, vector<1x128xf32>
    %22 = arith.mulf %6, %20 : vector<1x128xf32>
    %23 = arith.subf %21, %22 : vector<1x128xf32>
    %24 = vector.broadcast %20 : vector<1x128xf32> to vector<128x128xf32>
    %25 = arith.mulf %2, %24 : vector<128x128xf32>
    %26 = vector.broadcast %23 : vector<1x128xf32> to vector<128x128xf32>
    %27 = arith.addf %25, %26 : vector<128x128xf32>
    %28 = vector.broadcast %0 : vector<128x1xf32> to vector<128x128xf32>
    %29 = arith.mulf %27, %28 : vector<128x128xf32>
    %30 = arith.truncf %29 : vector<128x128xf32> to vector<128x128xbf16>
    %c0_14 = arith.constant 0 : index
    %c0_15 = arith.constant 0 : index
    %31 = vector.load %arg7[%c0_14, %c0_15] : memref<128x128xbf16, #tpu.memory_space<vmem>>, vector<128x128xbf16>
    %cst_16 = arith.constant dense<0.000000e+00> : vector<128x128xf32>
    %32 = tpu.matmul %30, %31, %cst_16 {dimension_numbers = #tpu.dot_dimension_numbers<[1], [0], [0], [1], [0, 0, 1, 1], [], []>} : vector<128x128xbf16>, vector<128x128xbf16>, vector<128x128xf32> -> vector<128x128xf32>
    %33 = vector.broadcast %1 : vector<128x1xf32> to vector<128x128xf32>
    %34 = arith.mulf %32, %33 : vector<128x128xf32>
    %35 = arith.truncf %34 : vector<128x128xf32> to vector<128x128xbf16>
    %c0_17 = arith.constant 0 : index
    %c0_18 = arith.constant 0 : index
    %36 = vector.load %arg23[%c0_17, %c0_18] : memref<128x128xbf16, #tpu.memory_space<vmem>>, vector<128x128xbf16>
    tpu.vector_store %arg23[%c0_17, %c0_18], %35 {strides = array<i32>} : memref<128x128xbf16, #tpu.memory_space<vmem>>, vector<128x128xbf16>,
    %c0_i32 = arith.constant 0 : i32
    %c0_i32_19 = arith.constant 0 : i32
    %c0_i32_20 = arith.constant 0 : i32
    %c0_i32_21 = arith.constant 0 : i32
    %37 = tpu.memref_slice %arg1[%c0_i32_20, %c0_i32_21] : memref<128x128xbf16, #tpu.memory_space<any>> -> memref<128x128xbf16, #tpu.memory_space<any>>
    %c0_i32_22 = arith.constant 0 : i32
    %c0_i32_23 = arith.constant 0 : i32
    %38 = tpu.memref_slice %arg21[%c0_i32, %c0_i32_22, %c0_i32_23] : memref<2x128x128xbf16, #tpu.memory_space<vmem>> -> memref<1x128x128xbf16, #tpu.memory_space<vmem>>
    %39 = tpu.memref_squeeze %38 : memref<1x128x128xbf16, #tpu.memory_space<vmem>> -> memref<128x128xbf16, #tpu.memory_space<vmem>>
    %40 = tpu.memref_slice %arg22[%c0_i32_19] : memref<2x!tpu.dma_semaphore, #tpu.memory_space<semaphore_mem>> -> memref<1x!tpu.dma_semaphore, #tpu.memory_space<semaphore_mem>>
    %41 = tpu.memref_squeeze %40 : memref<1x!tpu.dma_semaphore, #tpu.memory_space<semaphore_mem>> -> memref<!tpu.dma_semaphore, #tpu.memory_space<semaphore_mem>>
    tpu.enqueue_dma source(%37 : memref<128x128xbf16, #tpu.memory_space<any>>) target(%39 : memref<128x128xbf16, #tpu.memory_space<vmem>>) target_semaphore(%41 : memref<!tpu.dma_semaphore, #tpu.memory_space<semaphore_mem>>)
    %c0_i32_24 = arith.constant 0 : i32
    %c1_i32 = arith.constant 1 : i32
    %42 = arith.muli %c0_i32_24, %c1_i32 : i32
    %c0_i32_25 = arith.constant 0 : i32
    %43 = arith.addi %c0_i32_25, %42 : i32
    %c0_i32_26 = arith.constant 0 : i32
    %44 = arith.addi %43, %c0_i32_26 : i32
    %c1_i32_27 = arith.constant 1 : i32
    %45 = arith.andi %44, %c1_i32_27 : i32
    %c0_i32_28 = arith.constant 0 : i32
    %c0_i32_29 = arith.constant 0 : i32
    %46 = tpu.memref_slice %arg1[%c0_i32_28, %c0_i32_29] : memref<128x128xbf16, #tpu.memory_space<any>> -> memref<128x128xbf16, #tpu.memory_space<any>>
    %c0_i32_30 = arith.constant 0 : i32
    %c0_i32_31 = arith.constant 0 : i32
    %47 = tpu.memref_slice %arg21[%45, %c0_i32_30, %c0_i32_31] : memref<2x128x128xbf16, #tpu.memory_space<vmem>> -> memref<1x128x128xbf16, #tpu.memory_space<vmem>>
    %48 = tpu.memref_squeeze %47 : memref<1x128x128xbf16, #tpu.memory_space<vmem>> -> memref<128x128xbf16, #tpu.memory_space<vmem>>
    %49 = tpu.memref_slice %arg22[%45] : memref<2x!tpu.dma_semaphore, #tpu.memory_space<semaphore_mem>> -> memref<1x!tpu.dma_semaphore, #tpu.memory_space<semaphore_mem>>
    %50 = tpu.memref_squeeze %49 : memref<1x!tpu.dma_semaphore, #tpu.memory_space<semaphore_mem>> -> memref<!tpu.dma_semaphore, #tpu.memory_space<semaphore_mem>>
    tpu.wait_dma2 semaphore(%50 : memref<!tpu.dma_semaphore, #tpu.memory_space<semaphore_mem>>) src(%46 : memref<128x128xbf16, #tpu.memory_space<any>>) dst(%48 : memref<128x128xbf16, #tpu.memory_space<vmem>>)
    %c1_i32_32 = arith.constant 1 : i32
    %51 = arith.addi %43, %c1_i32_32 : i32
    %c1_i32_33 = arith.constant 1 : i32
    %52 = arith.cmpi slt, %51, %c1_i32_33 : i32
    %53 = arith.extui %52 : i1 to i32
    %c0_i32_34 = arith.constant 0 : i32
    %54 = arith.cmpi ne, %53, %c0_i32_34 : i32
    scf.if %54 {
      %c1_i32_119 = arith.constant 1 : i32
      %190 = arith.addi %43, %c1_i32_119 : i32
      %c1_i32_120 = arith.constant 1 : i32
      %191 = arith.subi %c1_i32_120, %45 : i32
      %c128_i32_121 = arith.constant 128 : i32
      %192 = arith.muli %190, %c128_i32_121 : i32
      %c0_i32_122 = arith.constant 0 : i32
      %193 = tpu.memref_slice %arg1[%192, %c0_i32_122] : memref<128x128xbf16, #tpu.memory_space<any>> -> memref<128x128xbf16, #tpu.memory_space<any>>
      %c0_i32_123 = arith.constant 0 : i32
      %c0_i32_124 = arith.constant 0 : i32
      %194 = tpu.memref_slice %arg21[%191, %c0_i32_123, %c0_i32_124] : memref<2x128x128xbf16, #tpu.memory_space<vmem>> -> memref<1x128x128xbf16, #tpu.memory_space<vmem>>
      %195 = tpu.memref_squeeze %194 : memref<1x128x128xbf16, #tpu.memory_space<vmem>> -> memref<128x128xbf16, #tpu.memory_space<vmem>>
      %196 = tpu.memref_slice %arg22[%191] : memref<2x!tpu.dma_semaphore, #tpu.memory_space<semaphore_mem>> -> memref<1x!tpu.dma_semaphore, #tpu.memory_space<semaphore_mem>>
      %197 = tpu.memref_squeeze %196 : memref<1x!tpu.dma_semaphore, #tpu.memory_space<semaphore_mem>> -> memref<!tpu.dma_semaphore, #tpu.memory_space<semaphore_mem>>
      tpu.enqueue_dma source(%193 : memref<128x128xbf16, #tpu.memory_space<any>>) target(%195 : memref<128x128xbf16, #tpu.memory_space<vmem>>) target_semaphore(%197 : memref<!tpu.dma_semaphore, #tpu.memory_space<semaphore_mem>>)
    } else {
    }
    %c128_i32 = arith.constant 128 : i32
    %55 = arith.muli %43, %c128_i32 : i32
    %56 = tpu.assume_multiple %55, 128 : i32
    %57 = arith.index_cast %45 : i32 to index
    %c0_35 = arith.constant 0 : index
    %c0_36 = arith.constant 0 : index
    %58 = vector.load %arg21[%57, %c0_35, %c0_36] : memref<2x128x128xbf16, #tpu.memory_space<vmem>>, vector<1x128x128xbf16>
    %59 = vector.shape_cast %58 : vector<1x128x128xbf16> to vector<128x128xbf16>
    %c0_37 = arith.constant 0 : index
    %c0_38 = arith.constant 0 : index
    %60 = vector.load %arg23[%c0_37, %c0_38] : memref<128x128xbf16, #tpu.memory_space<vmem>>, vector<128x128xbf16>
    %cst_39 = arith.constant dense<0.000000e+00> : vector<128x128xf32>
    %61 = tpu.matmul %59, %60, %cst_39 {dimension_numbers = #tpu.dot_dimension_numbers<[1], [0], [0], [1], [0, 0, 1, 1], [], []>} : vector<128x128xbf16>, vector<128x128xbf16>, vector<128x128xf32> -> vector<128x128xf32>
    %62 = arith.index_cast %56 : i32 to index
    %c0_40 = arith.constant 0 : index
    %63 = vector.load %arg24[%62, %c0_40] : memref<128x128xf32, #tpu.memory_space<vmem>>, vector<128x128xf32>
    tpu.vector_store %arg24[%62, %c0_40], %61 {strides = array<i32>} : memref<128x128xf32, #tpu.memory_space<vmem>>, vector<128x128xf32>,
    %c1_i32_41 = arith.constant 1 : i32
    %c0_42 = arith.constant 0 : index
    %c0_43 = arith.constant 0 : index
    %64 = vector.load %arg24[%c0_42, %c0_43] : memref<128x128xf32, #tpu.memory_space<vmem>>, vector<128x128xf32>
    %65 = arith.addf %64, %34 : vector<128x128xf32>
    %66 = vector.broadcast %1 : vector<128x1xf32> to vector<128x128xf32>
    %67 = arith.mulf %66, %65 : vector<128x128xf32>
    %c0_44 = arith.constant 0 : index
    %c0_45 = arith.constant 0 : index
    %68 = vector.load %arg8[%c0_44, %c0_45] : memref<1x128xf32, #tpu.memory_space<vmem>>, vector<1x128xf32>
    %69 = vector.broadcast %68 : vector<1x128xf32> to vector<128x128xf32>
    %70 = arith.addf %67, %69 : vector<128x128xf32>
    %cst_46 = arith.constant 0.000000e+00 : f32
    %71 = vector.broadcast %cst_46 : f32 to vector<128x128xf32>
    %72 = arith.maximumf %70, %71 : vector<128x128xf32>
    %73 = vector.broadcast %0 : vector<128x1xf32> to vector<128x128xf32>
    %74 = arith.mulf %72, %73 : vector<128x128xf32>
    %cst_47 = arith.constant dense<0.000000e+00> : vector<128xf32>
    %75 = vector.multi_reduction <add>, %74, %cst_47 [0] : vector<128x128xf32> to vector<128xf32>
    %76 = vector.shape_cast %75 : vector<128xf32> to vector<1x128xf32>
    %cst_48 = arith.constant 0.010416667 : f32
    %77 = vector.broadcast %cst_48 : f32 to vector<1x128xf32>
    %78 = arith.mulf %76, %77 : vector<1x128xf32>
    %79 = arith.mulf %74, %74 : vector<128x128xf32>
    %cst_49 = arith.constant dense<0.000000e+00> : vector<128xf32>
    %80 = vector.multi_reduction <add>, %79, %cst_49 [0] : vector<128x128xf32> to vector<128xf32>
    %81 = vector.shape_cast %80 : vector<128xf32> to vector<1x128xf32>
    %cst_50 = arith.constant 0.010416667 : f32
    %82 = vector.broadcast %cst_50 : f32 to vector<1x128xf32>
    %83 = arith.mulf %81, %82 : vector<1x128xf32>
    %84 = arith.mulf %78, %78 : vector<1x128xf32>
    %85 = arith.subf %83, %84 : vector<1x128xf32>
    %cst_51 = arith.constant 0.000000e+00 : f32
    %86 = vector.broadcast %cst_51 : f32 to vector<1x128xf32>
    %87 = arith.maximumf %85, %86 : vector<1x128xf32>
    %c0_52 = arith.constant 0 : index
    %c0_53 = arith.constant 0 : index
    %88 = vector.load %arg9[%c0_52, %c0_53] : memref<1x128xf32, #tpu.memory_space<vmem>>, vector<1x128xf32>
    %cst_54 = arith.constant 9.99999974E-6 : f32
    %89 = vector.broadcast %cst_54 : f32 to vector<1x128xf32>
    %90 = arith.addf %87, %89 : vector<1x128xf32>
    %91 = math.rsqrt %90 : vector<1x128xf32>
    %92 = arith.mulf %88, %91 : vector<1x128xf32>
    %c0_55 = arith.constant 0 : index
    %c0_56 = arith.constant 0 : index
    %93 = vector.load %arg10[%c0_55, %c0_56] : memref<1x128xf32, #tpu.memory_space<vmem>>, vector<1x128xf32>
    %94 = arith.mulf %78, %92 : vector<1x128xf32>
    %95 = arith.subf %93, %94 : vector<1x128xf32>
    %96 = vector.broadcast %92 : vector<1x128xf32> to vector<128x128xf32>
    %97 = arith.mulf %74, %96 : vector<128x128xf32>
    %98 = vector.broadcast %95 : vector<1x128xf32> to vector<128x128xf32>
    %99 = arith.addf %97, %98 : vector<128x128xf32>
    %100 = vector.broadcast %0 : vector<128x1xf32> to vector<128x128xf32>
    %101 = arith.mulf %99, %100 : vector<128x128xf32>
    %102 = arith.truncf %101 : vector<128x128xf32> to vector<128x128xbf16>
    %c0_57 = arith.constant 0 : index
    %c0_58 = arith.constant 0 : index
    %103 = vector.load %arg23[%c0_57, %c0_58] : memref<128x128xbf16, #tpu.memory_space<vmem>>, vector<128x128xbf16>
    tpu.vector_store %arg23[%c0_57, %c0_58], %102 {strides = array<i32>} : memref<128x128xbf16, #tpu.memory_space<vmem>>, vector<128x128xbf16>,
    %c1_i32_59 = arith.constant 1 : i32
    %c1_i32_60 = arith.constant 1 : i32
    %c0_i32_61 = arith.constant 0 : i32
    %c0_i32_62 = arith.constant 0 : i32
    %104 = tpu.memref_slice %arg1[%c0_i32_61, %c0_i32_62] : memref<128x128xbf16, #tpu.memory_space<any>> -> memref<128x128xbf16, #tpu.memory_space<any>>
    %c0_i32_63 = arith.constant 0 : i32
    %c0_i32_64 = arith.constant 0 : i32
    %105 = tpu.memref_slice %arg21[%c1_i32_59, %c0_i32_63, %c0_i32_64] : memref<2x128x128xbf16, #tpu.memory_space<vmem>> -> memref<1x128x128xbf16, #tpu.memory_space<vmem>>
    %106 = tpu.memref_squeeze %105 : memref<1x128x128xbf16, #tpu.memory_space<vmem>> -> memref<128x128xbf16, #tpu.memory_space<vmem>>
    %107 = tpu.memref_slice %arg22[%c1_i32_60] : memref<2x!tpu.dma_semaphore, #tpu.memory_space<semaphore_mem>> -> memref<1x!tpu.dma_semaphore, #tpu.memory_space<semaphore_mem>>
    %108 = tpu.memref_squeeze %107 : memref<1x!tpu.dma_semaphore, #tpu.memory_space<semaphore_mem>> -> memref<!tpu.dma_semaphore, #tpu.memory_space<semaphore_mem>>
    tpu.enqueue_dma source(%104 : memref<128x128xbf16, #tpu.memory_space<any>>) target(%106 : memref<128x128xbf16, #tpu.memory_space<vmem>>) target_semaphore(%108 : memref<!tpu.dma_semaphore, #tpu.memory_space<semaphore_mem>>)
    %c0_i32_65 = arith.constant 0 : i32
    %c1_i32_66 = arith.constant 1 : i32
    %109 = arith.muli %c0_i32_65, %c1_i32_66 : i32
    %c0_i32_67 = arith.constant 0 : i32
    %110 = arith.addi %c0_i32_67, %109 : i32
    %c1_i32_68 = arith.constant 1 : i32
    %111 = arith.addi %110, %c1_i32_68 : i32
    %c1_i32_69 = arith.constant 1 : i32
    %112 = arith.andi %111, %c1_i32_69 : i32
    %c0_i32_70 = arith.constant 0 : i32
    %c0_i32_71 = arith.constant 0 : i32
    %113 = tpu.memref_slice %arg1[%c0_i32_70, %c0_i32_71] : memref<128x128xbf16, #tpu.memory_space<any>> -> memref<128x128xbf16, #tpu.memory_space<any>>
    %c0_i32_72 = arith.constant 0 : i32
    %c0_i32_73 = arith.constant 0 : i32
    %114 = tpu.memref_slice %arg21[%112, %c0_i32_72, %c0_i32_73] : memref<2x128x128xbf16, #tpu.memory_space<vmem>> -> memref<1x128x128xbf16, #tpu.memory_space<vmem>>
    %115 = tpu.memref_squeeze %114 : memref<1x128x128xbf16, #tpu.memory_space<vmem>> -> memref<128x128xbf16, #tpu.memory_space<vmem>>
    %116 = tpu.memref_slice %arg22[%112] : memref<2x!tpu.dma_semaphore, #tpu.memory_space<semaphore_mem>> -> memref<1x!tpu.dma_semaphore, #tpu.memory_space<semaphore_mem>>
    %117 = tpu.memref_squeeze %116 : memref<1x!tpu.dma_semaphore, #tpu.memory_space<semaphore_mem>> -> memref<!tpu.dma_semaphore, #tpu.memory_space<semaphore_mem>>
    tpu.wait_dma2 semaphore(%117 : memref<!tpu.dma_semaphore, #tpu.memory_space<semaphore_mem>>) src(%113 : memref<128x128xbf16, #tpu.memory_space<any>>) dst(%115 : memref<128x128xbf16, #tpu.memory_space<vmem>>)
    %c1_i32_74 = arith.constant 1 : i32
    %118 = arith.addi %110, %c1_i32_74 : i32
    %c1_i32_75 = arith.constant 1 : i32
    %119 = arith.cmpi slt, %118, %c1_i32_75 : i32
    %120 = arith.extui %119 : i1 to i32
    %c0_i32_76 = arith.constant 0 : i32
    %121 = arith.cmpi ne, %120, %c0_i32_76 : i32
    scf.if %121 {
      %c1_i32_119 = arith.constant 1 : i32
      %190 = arith.addi %110, %c1_i32_119 : i32
      %c1_i32_120 = arith.constant 1 : i32
      %191 = arith.subi %c1_i32_120, %112 : i32
      %c128_i32_121 = arith.constant 128 : i32
      %192 = arith.muli %190, %c128_i32_121 : i32
      %c0_i32_122 = arith.constant 0 : i32
      %193 = tpu.memref_slice %arg1[%192, %c0_i32_122] : memref<128x128xbf16, #tpu.memory_space<any>> -> memref<128x128xbf16, #tpu.memory_space<any>>
      %c0_i32_123 = arith.constant 0 : i32
      %c0_i32_124 = arith.constant 0 : i32
      %194 = tpu.memref_slice %arg21[%191, %c0_i32_123, %c0_i32_124] : memref<2x128x128xbf16, #tpu.memory_space<vmem>> -> memref<1x128x128xbf16, #tpu.memory_space<vmem>>
      %195 = tpu.memref_squeeze %194 : memref<1x128x128xbf16, #tpu.memory_space<vmem>> -> memref<128x128xbf16, #tpu.memory_space<vmem>>
      %196 = tpu.memref_slice %arg22[%191] : memref<2x!tpu.dma_semaphore, #tpu.memory_space<semaphore_mem>> -> memref<1x!tpu.dma_semaphore, #tpu.memory_space<semaphore_mem>>
      %197 = tpu.memref_squeeze %196 : memref<1x!tpu.dma_semaphore, #tpu.memory_space<semaphore_mem>> -> memref<!tpu.dma_semaphore, #tpu.memory_space<semaphore_mem>>
      tpu.enqueue_dma source(%193 : memref<128x128xbf16, #tpu.memory_space<any>>) target(%195 : memref<128x128xbf16, #tpu.memory_space<vmem>>) target_semaphore(%197 : memref<!tpu.dma_semaphore, #tpu.memory_space<semaphore_mem>>)
    } else {
    }
    %c128_i32_77 = arith.constant 128 : i32
    %122 = arith.muli %110, %c128_i32_77 : i32
    %123 = tpu.assume_multiple %122, 128 : i32
    %124 = arith.index_cast %112 : i32 to index
    %c0_78 = arith.constant 0 : index
    %c0_79 = arith.constant 0 : index
    %125 = vector.load %arg21[%124, %c0_78, %c0_79] : memref<2x128x128xbf16, #tpu.memory_space<vmem>>, vector<1x128x128xbf16>
    %126 = vector.shape_cast %125 : vector<1x128x128xbf16> to vector<128x128xbf16>
    %c0_80 = arith.constant 0 : index
    %c0_81 = arith.constant 0 : index
    %127 = vector.load %arg23[%c0_80, %c0_81] : memref<128x128xbf16, #tpu.memory_space<vmem>>, vector<128x128xbf16>
    %cst_82 = arith.constant dense<0.000000e+00> : vector<128x128xf32>
    %128 = tpu.matmul %126, %127, %cst_82 {dimension_numbers = #tpu.dot_dimension_numbers<[1], [0], [0], [1], [0, 0, 1, 1], [], []>} : vector<128x128xbf16>, vector<128x128xbf16>, vector<128x128xf32> -> vector<128x128xf32>
    %129 = arith.index_cast %123 : i32 to index
    %c0_83 = arith.constant 0 : index
    %130 = vector.load %arg24[%129, %c0_83] : memref<128x128xf32, #tpu.memory_space<vmem>>, vector<128x128xf32>
    tpu.vector_store %arg24[%129, %c0_83], %128 {strides = array<i32>} : memref<128x128xf32, #tpu.memory_space<vmem>>, vector<128x128xf32>,
    %c1_i32_84 = arith.constant 1 : i32
    %c0_85 = arith.constant 0 : index
    %c0_86 = arith.constant 0 : index
    %131 = vector.load %arg11[%c0_85, %c0_86] : memref<128x128xbf16, #tpu.memory_space<vmem>>, vector<128x128xbf16>
    %cst_87 = arith.constant dense<0.000000e+00> : vector<128x128xf32>
    %132 = tpu.matmul %102, %131, %cst_87 {dimension_numbers = #tpu.dot_dimension_numbers<[1], [0], [0], [1], [0, 0, 1, 1], [], []>} : vector<128x128xbf16>, vector<128x128xbf16>, vector<128x128xf32> -> vector<128x128xf32>
    %c0_88 = arith.constant 0 : index
    %c0_89 = arith.constant 0 : index
    %133 = vector.load %arg24[%c0_88, %c0_89] : memref<128x128xf32, #tpu.memory_space<vmem>>, vector<128x128xf32>
    %134 = arith.truncf %133 : vector<128x128xf32> to vector<128x128xbf16>
    %c0_90 = arith.constant 0 : index
    %c0_91 = arith.constant 0 : index
    %135 = vector.load %arg12[%c0_90, %c0_91] : memref<128x128xbf16, #tpu.memory_space<vmem>>, vector<128x128xbf16>
    %cst_92 = arith.constant dense<0.000000e+00> : vector<128x128xf32>
    %136 = tpu.matmul %134, %135, %cst_92 {dimension_numbers = #tpu.dot_dimension_numbers<[1], [0], [0], [1], [0, 0, 1, 1], [], []>} : vector<128x128xbf16>, vector<128x128xbf16>, vector<128x128xf32> -> vector<128x128xf32>
    %137 = arith.addf %132, %136 : vector<128x128xf32>
    %c0_93 = arith.constant 0 : index
    %c0_94 = arith.constant 0 : index
    %138 = vector.load %arg13[%c0_93, %c0_94] : memref<1x128xf32, #tpu.memory_space<vmem>>, vector<1x128xf32>
    %139 = vector.broadcast %138 : vector<1x128xf32> to vector<128x128xf32>
    %140 = arith.addf %137, %139 : vector<128x128xf32>
    %cst_95 = arith.constant 0.000000e+00 : f32
    %141 = vector.broadcast %cst_95 : f32 to vector<128x128xf32>
    %142 = arith.maximumf %140, %141 : vector<128x128xf32>
    %143 = vector.broadcast %0 : vector<128x1xf32> to vector<128x128xf32>
    %144 = arith.mulf %142, %143 : vector<128x128xf32>
    %cst_96 = arith.constant dense<0.000000e+00> : vector<128xf32>
    %145 = vector.multi_reduction <add>, %144, %cst_96 [0] : vector<128x128xf32> to vector<128xf32>
    %146 = vector.shape_cast %145 : vector<128xf32> to vector<1x128xf32>
    %cst_97 = arith.constant 0.010416667 : f32
    %147 = vector.broadcast %cst_97 : f32 to vector<1x128xf32>
    %148 = arith.mulf %146, %147 : vector<1x128xf32>
    %149 = arith.mulf %144, %144 : vector<128x128xf32>
    %cst_98 = arith.constant dense<0.000000e+00> : vector<128xf32>
    %150 = vector.multi_reduction <add>, %149, %cst_98 [0] : vector<128x128xf32> to vector<128xf32>
    %151 = vector.shape_cast %150 : vector<128xf32> to vector<1x128xf32>
    %cst_99 = arith.constant 0.010416667 : f32
    %152 = vector.broadcast %cst_99 : f32 to vector<1x128xf32>
    %153 = arith.mulf %151, %152 : vector<1x128xf32>
    %154 = arith.mulf %148, %148 : vector<1x128xf32>
    %155 = arith.subf %153, %154 : vector<1x128xf32>
    %cst_100 = arith.constant 0.000000e+00 : f32
    %156 = vector.broadcast %cst_100 : f32 to vector<1x128xf32>
    %157 = arith.maximumf %155, %156 : vector<1x128xf32>
    %c0_101 = arith.constant 0 : index
    %c0_102 = arith.constant 0 : index
    %158 = vector.load %arg14[%c0_101, %c0_102] : memref<1x128xf32, #tpu.memory_space<vmem>>, vector<1x128xf32>
    %cst_103 = arith.constant 9.99999974E-6 : f32
    %159 = vector.broadcast %cst_103 : f32 to vector<1x128xf32>
    %160 = arith.addf %157, %159 : vector<1x128xf32>
    %161 = math.rsqrt %160 : vector<1x128xf32>
    %162 = arith.mulf %158, %161 : vector<1x128xf32>
    %c0_104 = arith.constant 0 : index
    %c0_105 = arith.constant 0 : index
    %163 = vector.load %arg15[%c0_104, %c0_105] : memref<1x128xf32, #tpu.memory_space<vmem>>, vector<1x128xf32>
    %164 = arith.mulf %148, %162 : vector<1x128xf32>
    %165 = arith.subf %163, %164 : vector<1x128xf32>
    %166 = vector.broadcast %162 : vector<1x128xf32> to vector<128x128xf32>
    %167 = arith.mulf %144, %166 : vector<128x128xf32>
    %168 = vector.broadcast %165 : vector<1x128xf32> to vector<128x128xf32>
    %169 = arith.addf %167, %168 : vector<128x128xf32>
    %170 = vector.broadcast %0 : vector<128x1xf32> to vector<128x128xf32>
    %171 = arith.mulf %169, %170 : vector<128x128xf32>
    %172 = arith.addf %171, %29 : vector<128x128xf32>
    %173 = arith.truncf %172 : vector<128x128xf32> to vector<128x128xbf16>
    %c0_106 = arith.constant 0 : index
    %c0_107 = arith.constant 0 : index
    %174 = vector.load %arg16[%c0_106, %c0_107] : memref<128x128xbf16, #tpu.memory_space<vmem>>, vector<128x128xbf16>
    %cst_108 = arith.constant dense<0.000000e+00> : vector<128x128xf32>
    %175 = tpu.matmul %173, %174, %cst_108 {dimension_numbers = #tpu.dot_dimension_numbers<[1], [0], [0], [1], [0, 0, 1, 1], [], []>} : vector<128x128xbf16>, vector<128x128xbf16>, vector<128x128xf32> -> vector<128x128xf32>
    %c0_109 = arith.constant 0 : index
    %c0_110 = arith.constant 0 : index
    %176 = vector.load %arg17[%c0_109, %c0_110] : memref<1x128xf32, #tpu.memory_space<vmem>>, vector<1x128xf32>
    %177 = vector.broadcast %176 : vector<1x128xf32> to vector<128x128xf32>
    %178 = arith.addf %175, %177 : vector<128x128xf32>
    %cst_111 = arith.constant 0.000000e+00 : f32
    %179 = vector.broadcast %cst_111 : f32 to vector<128x128xf32>
    %180 = arith.maximumf %178, %179 : vector<128x128xf32>
    %181 = arith.truncf %180 : vector<128x128xf32> to vector<128x128xbf16>
    %c0_112 = arith.constant 0 : index
    %c0_113 = arith.constant 0 : index
    %182 = vector.load %arg18[%c0_112, %c0_113] : memref<128x128xbf16, #tpu.memory_space<vmem>>, vector<128x128xbf16>
    %cst_114 = arith.constant dense<0.000000e+00> : vector<128x128xf32>
    %183 = tpu.matmul %181, %182, %cst_114 {dimension_numbers = #tpu.dot_dimension_numbers<[1], [0], [0], [1], [0, 0, 1, 1], [], []>} : vector<128x128xbf16>, vector<128x128xbf16>, vector<128x128xf32> -> vector<128x128xf32>
    %c0_115 = arith.constant 0 : index
    %c0_116 = arith.constant 0 : index
    %184 = vector.load %arg19[%c0_115, %c0_116] : memref<1x128xf32, #tpu.memory_space<vmem>>, vector<1x128xf32>
    %185 = vector.broadcast %184 : vector<1x128xf32> to vector<128x128xf32>
    %186 = arith.addf %183, %185 : vector<128x128xf32>
    %187 = vector.broadcast %0 : vector<128x1xf32> to vector<128x128xf32>
    %188 = arith.mulf %186, %187 : vector<128x128xf32>
    %c0_117 = arith.constant 0 : index
    %c0_118 = arith.constant 0 : index
    %189 = vector.load %arg20[%c0_117, %c0_118] : memref<128x128xf32, #tpu.memory_space<vmem>>, vector<128x128xf32>
    tpu.vector_store %arg20[%c0_117, %c0_118], %188 {strides = array<i32>} : memref<128x128xf32, #tpu.memory_space<vmem>>, vector<128x128xf32>,
    return
  }
  func.func @transform_1(%arg0: i32) -> (i32, i32) {
    %c0_i32 = arith.constant 0 : i32
    %c0_i32_0 = arith.constant 0 : i32
    %c0_i32_1 = arith.constant 0 : i32
    return %c0_i32, %c0_i32_0 : i32, i32
  }
  func.func @transform_2(%arg0: i32) -> (i32, i32) {
    %c0_i32 = arith.constant 0 : i32
    %c0_i32_0 = arith.constant 0 : i32
    %c0_i32_1 = arith.constant 0 : i32
    return %c0_i32, %c0_i32_0 : i32, i32
  }
  func.func @transform_3(%arg0: i32) -> (i32, i32) {
    %c0_i32 = arith.constant 0 : i32
    %c0_i32_0 = arith.constant 0 : i32
    %c0_i32_1 = arith.constant 0 : i32
    return %c0_i32, %c0_i32_0 : i32, i32
  }
  func.func @transform_4(%arg0: i32) -> (i32, i32) {
    %c0_i32 = arith.constant 0 : i32
    %c0_i32_0 = arith.constant 0 : i32
    %c0_i32_1 = arith.constant 0 : i32
    return %c0_i32, %c0_i32_0 : i32, i32
  }
  func.func @transform_5(%arg0: i32) -> (i32, i32) {
    %c0_i32 = arith.constant 0 : i32
    %c0_i32_0 = arith.constant 0 : i32
    %c0_i32_1 = arith.constant 0 : i32
    return %c0_i32, %c0_i32_0 : i32, i32
  }
  func.func @transform_6(%arg0: i32) -> (i32, i32) {
    %c0_i32 = arith.constant 0 : i32
    %c0_i32_0 = arith.constant 0 : i32
    %c0_i32_1 = arith.constant 0 : i32
    return %c0_i32, %c0_i32_0 : i32, i32
  }
  func.func @transform_7(%arg0: i32) -> (i32, i32) {
    %c0_i32 = arith.constant 0 : i32
    %c0_i32_0 = arith.constant 0 : i32
    %c0_i32_1 = arith.constant 0 : i32
    return %c0_i32, %c0_i32_0 : i32, i32
  }
  func.func @transform_8(%arg0: i32) -> (i32, i32) {
    %c0_i32 = arith.constant 0 : i32
    %c0_i32_0 = arith.constant 0 : i32
    %c0_i32_1 = arith.constant 0 : i32
    return %c0_i32, %c0_i32_0 : i32, i32
  }
  func.func @transform_9(%arg0: i32) -> (i32, i32) {
    %c0_i32 = arith.constant 0 : i32
    %c0_i32_0 = arith.constant 0 : i32
    %c0_i32_1 = arith.constant 0 : i32
    return %c0_i32, %c0_i32_0 : i32, i32
  }
  func.func @transform_10(%arg0: i32) -> (i32, i32) {
    %c0_i32 = arith.constant 0 : i32
    %c0_i32_0 = arith.constant 0 : i32
    %c0_i32_1 = arith.constant 0 : i32
    return %c0_i32, %c0_i32_0 : i32, i32
  }
  func.func @transform_11(%arg0: i32) -> (i32, i32) {
    %c0_i32 = arith.constant 0 : i32
    %c0_i32_0 = arith.constant 0 : i32
    %c0_i32_1 = arith.constant 0 : i32
    return %c0_i32, %c0_i32_0 : i32, i32
  }
  func.func @transform_12(%arg0: i32) -> (i32, i32) {
    %c0_i32 = arith.constant 0 : i32
    %c0_i32_0 = arith.constant 0 : i32
    %c0_i32_1 = arith.constant 0 : i32
    return %c0_i32, %c0_i32_0 : i32, i32
  }
  func.func @transform_13(%arg0: i32) -> (i32, i32) {
    %c0_i32 = arith.constant 0 : i32
    %c0_i32_0 = arith.constant 0 : i32
    %c0_i32_1 = arith.constant 0 : i32
    return %c0_i32, %c0_i32_0 : i32, i32
  }
  func.func @transform_14(%arg0: i32) -> (i32, i32) {
    %c0_i32 = arith.constant 0 : i32
    %c0_i32_0 = arith.constant 0 : i32
    %c0_i32_1 = arith.constant 0 : i32
    return %c0_i32, %c0_i32_0 : i32, i32
  }
  func.func @transform_15(%arg0: i32) -> (i32, i32) {
    %c0_i32 = arith.constant 0 : i32
    %c0_i32_0 = arith.constant 0 : i32
    %c0_i32_1 = arith.constant 0 : i32
    return %c0_i32, %c0_i32_0 : i32, i32
  }
  func.func @transform_16(%arg0: i32) -> (i32, i32) {
    %c0_i32 = arith.constant 0 : i32
    %c0_i32_0 = arith.constant 0 : i32
    %c0_i32_1 = arith.constant 0 : i32
    return %c0_i32, %c0_i32_0 : i32, i32
  }
  func.func @transform_17(%arg0: i32) -> (i32, i32) {
    %c0_i32 = arith.constant 0 : i32
    %c0_i32_0 = arith.constant 0 : i32
    %c0_i32_1 = arith.constant 0 : i32
    return %c0_i32, %c0_i32_0 : i32, i32
  }
  func.func @transform_18(%arg0: i32) -> (i32, i32) {
    %c0_i32 = arith.constant 0 : i32
    %c0_i32_0 = arith.constant 0 : i32
    %c0_i32_1 = arith.constant 0 : i32
    return %c0_i32, %c0_i32_0 : i32, i32
  }
  func.func @transform_19(%arg0: i32) -> (i32, i32) {
    %c0_i32 = arith.constant 0 : i32
    %c0_i32_0 = arith.constant 0 : i32
    %c0_i32_1 = arith.constant 0 : i32
    return %c0_i32, %c0_i32_0 : i32, i32
  }
}

</mosaic_0001>

<bundles_post_ra>
// kernel: tpu_custom_call.1
= control target key start
LH: loop header
LB: loop body
LE: loop exit
PB: predicated region body
PF: predicated region fallthrough
CT: control target
= control target key end

     0   :  { %s4579_s0 = inlined_call_operand.vmem [shape: bf16[128,128], index: 0, kind: input, shape index: {}]   ;;  %s4580_s1 = inlined_call_operand.vmem [shape: f32[128,128], index: 1, kind: input, shape index: {}]   ;;  %s4581_s2 = inlined_call_operand.vmem [shape: f32[128,1], index: 2, kind: input, shape index: {}]   ;;  %s4582_s3 = inlined_call_operand.vmem [shape: f32[128,1], index: 3, kind: input, shape index: {}]   ;;  %s4583_s4 = inlined_call_operand.vmem [shape: f32[1,128], index: 4, kind: input, shape index: {}]   ;;  %s4584_s5 = inlined_call_operand.vmem [shape: f32[1,128], index: 5, kind: input, shape index: {}]   ;;  %s4585_s6 = inlined_call_operand.vmem [shape: bf16[128,128], index: 6, kind: input, shape index: {}]   ;;  %s4586_s7 = inlined_call_operand.vmem [shape: f32[1,128], index: 7, kind: input, shape index: {}]   ;;  %s4587_s8 = inlined_call_operand.vmem [shape: f32[1,128], index: 8, kind: input, shape index: {}]   ;;  %s4588_s9 = inlined_call_operand.vmem [shape: f32[1,128], index: 9, kind: input, shape index: {}]   ;;  %s4589_s10 = inlined_call_operand.hbm [shape: bf16[128,128], index: 10, kind: input, shape index: {}]   ;;  %s4590_s11 = inlined_call_operand.hbm [shape: bf16[128,128], index: 11, kind: input, shape index: {}]   ;;  %s4591_s12 = inlined_call_operand.vmem [shape: f32[1,128], index: 12, kind: input, shape index: {}]   ;;  %s4592_s13 = inlined_call_operand.vmem [shape: f32[1,128], index: 13, kind: input, shape index: {}]   ;;  %s4593_s14 = inlined_call_operand.vmem [shape: f32[1,128], index: 14, kind: input, shape index: {}]   ;;  %s4594_s15 = inlined_call_operand.hbm [shape: bf16[128,128], index: 15, kind: input, shape index: {}]   ;;  %s4595_s16 = inlined_call_operand.vmem [shape: f32[1,128], index: 16, kind: input, shape index: {}]   ;;  %s4596_s17 = inlined_call_operand.hbm [shape: bf16[128,128], index: 17, kind: input, shape index: {}]   ;;  %s4597_s18 = inlined_call_operand.vmem [shape: f32[1,128], index: 18, kind: input, shape index: {}]   ;;  %s4598_s19 = inlined_call_operand.hbm [shape: f32[128,128], index: 19, kind: output, shape index: {}]  }
   0x1   :  { %4617 = sst [smem:[#allocation37_spill]] %s4579_s0 }
   0x2   :  { %4618 = sst [smem:[#allocation38_spill]] %s4580_s1 }
   0x3   :  { %4619 = sst [smem:[#allocation39_spill]] %s4581_s2 }
   0x4   :  { %4620 = sst [smem:[#allocation40_spill]] %s4582_s3 }
   0x5   :  { %24 = vsyncpa [#allocation7], 0 }
   0x6   :  { %25 = vsyncpa [#allocation10], 0 }
   0x7   :  { %26 = vsyncpa [#allocation13], 0 }
   0x8   :  { %27 = vsyncpa [#allocation8], 0  ;;  %s3422_s0 = smov [#allocation9]   ;;  %s3423_s20 = smov [#allocation6]  }
   0x9   :  { %s63_s30 = sshll.u32 %s3422_s0, 4  ;;  %s51_s21 = sshll.u32 %s3423_s20, 4  ;;  %s64_s30 = int_to_ptr.vmem [resolvable:$true] %s63_s30  ;;  %s52_s21 = int_to_ptr.vmem [resolvable:$true] %s51_s21 }
   0xa   :  { %s3318_s1 = scalar_lea.vmem %s64_s30, 1024  ;;  %p3323_p1 = scmp.lt.s32.totalorder %s64_s30, %s64_s30 }
   0xb   :  { %p3319_p0 = scmp.ne.s32.totalorder %s64_s30, %s3318_s1  ;;  %p3324_p2 = scmp.lt.s32.totalorder %s3318_s1, %s3318_s1 }
   0xd   :  { %p3325_p3 = por %p3324_p2, %p3323_p1 }
   0xf   :  { %p3326_p4 = pnand %p3325_p3, %p3319_p0 }
  0x11   :  { %3329 = shalt.err (!%p3326_p4)
}
  0x12   :  { %s3424_s22 = smov 64   ;;  %s3425_s2 = smov 4  }
  0x13   :  { %69 = dma.hbm_to_vmem [thread:$0]  %s4590_s11, 1024, %s64_s30, [#allocation10], %s3424_s22, %s3424_s22, %s3425_s2  }
  0x14   :  { %s3338_s25 = scalar_lea.vmem %s52_s21, 1024  ;;  %p3343_p6 = scmp.lt.s32.totalorder %s52_s21, %s52_s21 }
  0x15   :  { %p3339_p5 = scmp.ne.s32.totalorder %s52_s21, %s3338_s25  ;;  %p3344_p7 = scmp.lt.s32.totalorder %s3338_s25, %s3338_s25 }
  0x17   :  { %p3345_p8 = por %p3344_p7, %p3343_p6 }
  0x19   :  { %p3346_p9 = pnand %p3345_p8, %p3339_p5 }
  0x1b   :  { %3349 = shalt.err (!%p3346_p9)
}
  0x1c   :  { %57 = dma.hbm_to_vmem [thread:$0]  %s4589_s10, 1024, %s52_s21, [#allocation7], %s3424_s22, %s3424_s22, %s3425_s2  }
  0x1d   :  { %s3426_s27 = smov [#allocation11]   ;;  %s3427_s29 = smov [#allocation12]  }
  0x1e   :  { %s81_s28 = sshll.u32 %s3426_s27, 4  ;;  %s95_s0 = sshll.u32 %s3427_s29, 4  ;;  %s82_s28 = int_to_ptr.vmem [resolvable:$true] %s81_s28  ;;  %s96_s0 = int_to_ptr.vmem [resolvable:$true] %s95_s0 }
  0x1f   :  { %s3358_s11 = scalar_lea.vmem %s82_s28, 1024  ;;  %p3363_p11 = scmp.lt.s32.totalorder %s82_s28, %s82_s28 }
  0x20   :  { %p3359_p10 = scmp.ne.s32.totalorder %s82_s28, %s3358_s11  ;;  %p3364_p12 = scmp.lt.s32.totalorder %s3358_s11, %s3358_s11 }
  0x22   :  { %p3365_p13 = por %p3364_p12, %p3363_p11 }
  0x24   :  { %p3366_p0 = pnand %p3365_p13, %p3359_p10 }
  0x26   :  { %3369 = shalt.err (!%p3366_p0)
}
  0x27   :  { %87 = dma.hbm_to_vmem [thread:$0]  %s4594_s15, 1024, %s82_s28, [#allocation10], %s3424_s22, %s3424_s22, %s3425_s2  }
  0x28   :  { %s3378_s10 = scalar_lea.vmem %s96_s0, 1024  ;;  %p3383_p2 = scmp.lt.s32.totalorder %s96_s0, %s96_s0 }
  0x29   :  { %p3379_p1 = scmp.ne.s32.totalorder %s96_s0, %s3378_s10  ;;  %p3384_p3 = scmp.lt.s32.totalorder %s3378_s10, %s3378_s10 }
  0x2b   :  { %p3385_p4 = por %p3384_p3, %p3383_p2 }
  0x2d   :  { %p3386_p5 = pnand %p3385_p4, %p3379_p1 }
  0x2f   :  { %3389 = shalt.err (!%p3386_p5)
}
  0x30   :  { %101 = dma.hbm_to_vmem [thread:$0]  %s4596_s17, 1024, %s96_s0, [#allocation13], %s3424_s22, %s3424_s22, %s3425_s2  }
  0x31   :  { %3410 = dma.done.wait [#allocation7], 1024  }
  0x32   :  { %3411 = vsyncadd [#allocation7], 4294966272 }
  0x33   :  { %3412 = dma.done.wait [#allocation10], 2048  }
  0x34   :  { %3413 = vsyncadd [#allocation10], 4294965248 }
  0x35   :  { %3414 = dma.done.wait [#allocation13], 1024  }
  0x36   :  { %3415 = vsyncadd [#allocation13], 4294966272  ;;  %v3428_v0 = vmov 0   ;;  %s4621_s24 = sld [smem:[#allocation37_spill]]  ;;  %v3232_v17 = vld [vmem:[%s4585_s6 + $0x38] sm:$0xff]   ;;  %v3233_v18 = vld [vmem:[%s4585_s6 + $0x30] sm:$0xff]  }
  0x37   :  { %3231 = vset.pattern.permute.xlu1 %v3428_v0  ;;  %3230 = vset.pattern.permute.xlu0 %v3428_v0  ;;  %s4622_s15 = sld [smem:[#allocation39_spill]]  ;;  %v3234_v21 = vld [vmem:[%s4585_s6 + $0x28] sm:$0xff]   ;;  %v3235_v32 = vld [vmem:[%s4585_s6 + $0x20] sm:$0xff]   ;;  %v3236_v41 = vld [vmem:[%s4585_s6 + $0x18] sm:$0xff]  }
  0x38   :  { %2980 = vmatprep.subr.bf16.mxu0 %v3232_v17  ;;  %s4623_s29 = sld [smem:[#allocation38_spill]]  ;;  %v3237_v54 = vld [vmem:[%s4585_s6 + $0x10] sm:$0xff]  }
  0x39   :  { %2981 = vmatpush3.bf16.msra.mxu0 %v3232_v17  ;;  %s4624_s20 = sld [smem:[#allocation40_spill]] }
  0x3a   :  { %2982 = vmatprep.subr.bf16.mxu0 %v3233_v18 }
  0x3c   :  { %v753_v1 = vld [vmem:[%s4621_s24] sm:$0xff]  ;;  %v755_v2 = vld [vmem:[%s4621_s24 + $0x8] sm:$0xff]  ;;  %v757_v3 = vld [vmem:[%s4621_s24 + $0x10] sm:$0xff] }
  0x3d   :  { %754 = vst [vmem:[#allocation2] sm:$0xff] %v753_v1  ;;  %756 = vst [vmem:[#allocation2 + $0x8] sm:$0xff] %v755_v2  ;;  %v759_v4 = vld [vmem:[%s4621_s24 + $0x18] sm:$0xff]  ;;  %v761_v5 = vld [vmem:[%s4621_s24 + $0x20] sm:$0xff]  ;;  %2983 = vmatpush3.bf16.msra.mxu0 %v3233_v18 }
  0x3e   :  { %758 = vst [vmem:[#allocation2 + $0x10] sm:$0xff] %v757_v3  ;;  %v763_v6 = vld [vmem:[%s4621_s24 + $0x28] sm:$0xff]  ;;  %760 = vst [vmem:[#allocation2 + $0x18] sm:$0xff] %v759_v4  ;;  %v765_v7 = vld [vmem:[%s4621_s24 + $0x30] sm:$0xff]  ;;  %2984 = vmatprep.subr.bf16.mxu0 %v3234_v21 }
  0x3f   :  { %762 = vst [vmem:[#allocation2 + $0x20] sm:$0xff] %v761_v5  ;;  %764 = vst [vmem:[#allocation2 + $0x28] sm:$0xff] %v763_v6  ;;  %v767_v8 = vld [vmem:[%s4621_s24 + $0x38] sm:$0xff]  ;;  %v119_v9 = vld [vmem:[%s4622_s15 + $0x10] sm:$0xff] }
  0x40   :  { %766 = vst [vmem:[#allocation2 + $0x30] sm:$0xff] %v765_v7  ;;  %768 = vst [vmem:[#allocation2 + $0x38] sm:$0xff] %v767_v8  ;;  %291 = vperm.xlu1 %3231, %v119_v9   ;;  %v117_v10 = vld [vmem:[%s4622_s15] sm:$0xff]  ;;  %v120_v11 = vld [vmem:[%s4622_s15 + $0x18] sm:$0xff] }
  0x41   :  { %281 = vperm.xlu0 %3230, %v117_v10   ;;  %v118_v12 = vld [vmem:[%s4622_s15 + $0x8] sm:$0xff]  ;;  %v121_v14 = vld [vmem:[%s4622_s15 + $0x20] sm:$0xff]  ;;  %v124_v15 = vld [vmem:[%s4622_s15 + $0x38] sm:$0xff]  ;;  %2985 = vmatpush3.bf16.msra.mxu0 %v3234_v21 }
  0x42   :  { %v122_v13 = vld [vmem:[%s4622_s15 + $0x28] sm:$0xff]  ;;  %v123_v16 = vld [vmem:[%s4622_s15 + $0x30] sm:$0xff]  ;;  %v125_v20 = vld [vmem:[%s4622_s15 + $0x40] sm:$0xff]  ;;  %2986 = vmatprep.subr.bf16.mxu0 %v3235_v32 }
  0x43   :  { %v126_v19 = vld [vmem:[%s4622_s15 + $0x48] sm:$0xff]  ;;  %v3622_v22 = vld [vmem:[%s4623_s29] sm:$0xff]  ;;  %v128_v24 = vld [vmem:[%s4622_s15 + $0x58] sm:$0xff] }
  0x44   :  { %296 = vperm.xlu1 %3231, %v120_v11   ;;  %v3627_v23 = vld [vmem:[%s4623_s29 + $0x8] sm:$0xff]  ;;  %v3635_v25 = vld [vmem:[%s4623_s29 + $0x10] sm:$0xff]  ;;  %v3640_v26 = vld [vmem:[%s4623_s29 + $0x18] sm:$0xff]  ;;  %v187_v28 = vmul.f32 %v3622_v22, %v3622_v22 }
  0x45   :  { %286 = vperm.xlu0 %3230, %v118_v12   ;;  %v165_v27 = vadd.f32 %v3627_v23, %v3622_v22  ;;  %v188_v29 = vmul.f32 %v3627_v23, %v3627_v23  ;;  %v127_v30 = vld [vmem:[%s4622_s15 + $0x50] sm:$0xff]  ;;  %v189_v31 = vmul.f32 %v3635_v25, %v3635_v25  ;;  %v3659_v33 = vld [vmem:[%s4623_s29 + $0x20] sm:$0xff]  ;;  %v190_v35 = vmul.f32 %v3640_v26, %v3640_v26  ;;  %v130_v37 = vld [vmem:[%s4622_s15 + $0x68] sm:$0xff] }
  0x46   :  { %v129_v38 = vld [vmem:[%s4622_s15 + $0x60] sm:$0xff]  ;;  %v3673_v39 = vld [vmem:[%s4623_s29 + $0x28] sm:$0xff]  ;;  %v191_v42 = vmul.f32 %v3659_v33, %v3659_v33  ;;  %v3684_v44 = vld [vmem:[%s4623_s29 + $0x30] sm:$0xff]  ;;  %2987 = vmatpush3.bf16.msra.mxu0 %v3235_v32 }
  0x47   :  { %v166_v34 = vadd.f32 %v165_v27, %v3635_v25  ;;  %v203_v36 = vadd.f32 %v188_v29, %v187_v28  ;;  %v192_v46 = vmul.f32 %v3673_v39, %v3673_v39  ;;  %v132_v48 = vld [vmem:[%s4622_s15 + $0x78] sm:$0xff]  ;;  %v131_v51 = vld [vmem:[%s4622_s15 + $0x70] sm:$0xff]  ;;  %v193_v52 = vmul.f32 %v3684_v44, %v3684_v44  ;;  %2988 = vmatprep.subr.bf16.mxu0 %v3236_v41  ;;  %v3709_v55 = vld [vmem:[%s4623_s29 + $0x40] sm:$0xff] }
  0x48   :  { %306 = vperm.xlu1 %3231, %v122_v13   ;;  %v3695_v49 = vld [vmem:[%s4623_s29 + $0x38] sm:$0xff]  ;;  %v134_v59 = vld [vmem:[%s4624_s20 + $0x8] sm:$0xff]  ;;  %v133_v62 = vld [vmem:[%s4624_s20] sm:$0xff]  ;;  %v195_v63 = vmul.f32 %v3709_v55, %v3709_v55 }
  0x49   :  { %301 = vperm.xlu0 %3230, %v121_v14   ;;  %v167_v40 = vadd.f32 %v166_v34, %v3640_v26  ;;  %v204_v43 = vadd.f32 %v203_v36, %v189_v31  ;;  %v194_v57 = vmul.f32 %v3695_v49, %v3695_v49  ;;  %v3720_v60 = vld [vmem:[%s4623_s29 + $0x48] sm:$0xff]  ;;  %v3731_v1 = vld [vmem:[%s4623_s29 + $0x50] sm:$0xff]  ;;  %v136_v6 = vld [vmem:[%s4624_s20 + $0x18] sm:$0xff] }
  0x4a   :  { %2989 = vmatpush3.bf16.msra.mxu0 %v3236_v41  ;;  %v3238_v3 = vld [vmem:[%s4585_s6 + $0x8] sm:$0xff]   ;;  %v196_v4 = vmul.f32 %v3720_v60, %v3720_v60  ;;  %v3745_v7 = vld [vmem:[%s4623_s29 + $0x58] sm:$0xff]  ;;  %v135_v9 = vld [vmem:[%s4624_s20 + $0x10] sm:$0xff]  ;;  %v197_v10 = vmul.f32 %v3731_v1, %v3731_v1 }
  0x4b   :  { %v168_v45 = vadd.f32 %v167_v40, %v3659_v33  ;;  %v205_v47 = vadd.f32 %v204_v43, %v190_v35  ;;  %2990 = vmatprep.subr.bf16.mxu0 %v3237_v54  ;;  %v3756_v12 = vld [vmem:[%s4623_s29 + $0x60] sm:$0xff]  ;;  %v138_v17 = vld [vmem:[%s4624_s20 + $0x28] sm:$0xff]  ;;  %v3781_v27 = vld [vmem:[%s4623_s29 + $0x70] sm:$0xff] }
  0x4c   :  { %316 = vperm.xlu1 %3231, %v124_v15   ;;  %v3239_v14 = vld [vmem:[%s4585_s6] sm:$0xff]   ;;  %v198_v15 = vmul.f32 %v3745_v7, %v3745_v7  ;;  %v3770_v18 = vld [vmem:[%s4623_s29 + $0x68] sm:$0xff]  ;;  %v199_v21 = vmul.f32 %v3756_v12, %v3756_v12  ;;  %v140_v31 = vld [vmem:[%s4624_s20 + $0x38] sm:$0xff]  ;;  %v201_v36 = vmul.f32 %v3781_v27, %v3781_v27 }
  0x4d   :  { %311 = vperm.xlu0 %3230, %v123_v16   ;;  %v169_v50 = vadd.f32 %v168_v45, %v3673_v39  ;;  %v206_v53 = vadd.f32 %v205_v47, %v191_v42  ;;  %v200_v29 = vmul.f32 %v3770_v18, %v3770_v18  ;;  %v3792_v32 = vld [vmem:[%s4623_s29 + $0x78] sm:$0xff]  ;;  %v139_v35 = vld [vmem:[%s4624_s20 + $0x30] sm:$0xff]  ;;  %v142_v42 = vld [vmem:[%s4624_s20 + $0x48] sm:$0xff] }
  0x4e   :  { %2991 = vmatpush3.bf16.msra.mxu0 %v3237_v54  ;;  %v202_v40 = vmul.f32 %v3792_v32, %v3792_v32  ;;  %v141_v45 = vld [vmem:[%s4624_s20 + $0x40] sm:$0xff]  ;;  %v146_v54 = vld [vmem:[%s4624_s20 + $0x68] sm:$0xff] }
  0x4f   :  { %v170_v56 = vadd.f32 %v169_v50, %v3684_v44  ;;  %v207_v58 = vadd.f32 %v206_v53, %v192_v46  ;;  %2992 = vmatprep.subr.bf16.mxu0 %v3238_v3  ;;  %v144_v50 = vld [vmem:[%s4624_s20 + $0x58] sm:$0xff] }
  0x50   :  { %326 = vperm.xlu1 %3231, %v126_v19  }
  0x51   :  { %321 = vperm.xlu0 %3230, %v125_v20   ;;  %v171_v61 = vadd.f32 %v170_v56, %v3695_v49  ;;  %v208_v0 = vadd.f32 %v207_v58, %v193_v52  ;;  %v137_v20 = vld [vmem:[%s4624_s20 + $0x20] sm:$0xff] }
  0x52   :  { %2993 = vmatpush3.bf16.msra.mxu0 %v3238_v3  ;;  %v145_v56 = vld [vmem:[%s4624_s20 + $0x60] sm:$0xff] }
  0x53   :  { %v172_v2 = vadd.f32 %v171_v61, %v3709_v55  ;;  %v209_v5 = vadd.f32 %v208_v0, %v194_v57  ;;  %2994 = vmatprep.subr.bf16.mxu0 %v3239_v14  ;;  %v147_v61 = vld [vmem:[%s4624_s20 + $0x70] sm:$0xff] }
  0x54   :  { %336 = vperm.xlu1 %3231, %v128_v24  }
  0x55   :  { %331 = vperm.xlu0 %3230, %v127_v30   ;;  %v173_v8 = vadd.f32 %v172_v2, %v3720_v60  ;;  %v210_v11 = vadd.f32 %v209_v5, %v195_v63 }
  0x56   :  { %2995 = vmatpush3.bf16.msra.mxu0 %v3239_v14  ;;  %v236_v14 = vlaneseq }
  0x57   :  { %v174_v13 = vadd.f32 %v173_v8, %v3731_v1  ;;  %v211_v16 = vadd.f32 %v210_v11, %v196_v4 }
  0x58   :  { %346 = vperm.xlu1 %3231, %v130_v37  }
  0x59   :  { %341 = vperm.xlu0 %3230, %v129_v38   ;;  %v175_v19 = vadd.f32 %v174_v13, %v3745_v7  ;;  %v212_v24 = vadd.f32 %v211_v16, %v197_v10  ;;  %v228_v16 = vld [vmem:[%s4583_s4] sm:$0x1] }
  0x5b   :  { %v176_v28 = vadd.f32 %v175_v19, %v3756_v12  ;;  %v213_v30 = vadd.f32 %v212_v24, %v198_v15  ;;  %v237_v19 = vshrl.u32 %v236_v14, 7  ;;  %v232_v24 = vld [vmem:[%s4584_s5] sm:$0x1] }
  0x5c   :  { %356 = vperm.xlu1 %3231, %v132_v48  }
  0x5d   :  { %351 = vperm.xlu0 %3230, %v131_v51   ;;  %v177_v34 = vadd.f32 %v176_v28, %v3770_v18  ;;  %v214_v37 = vadd.f32 %v213_v30, %v199_v21  ;;  %v143_v51 = vld [vmem:[%s4624_s20 + $0x50] sm:$0xff]  ;;  %v3831_v21 = vsub.s32 0, %v237_v19 }
  0x5f   :  { %v178_v38 = vadd.f32 %v177_v34, %v3781_v27  ;;  %v215_v41 = vadd.f32 %v214_v37, %v200_v29 }
  0x60   :  { %551 = vperm.xlu1 %3231, %v134_v59   ;;  %v148_v59 = vld [vmem:[%s4624_s20 + $0x78] sm:$0xff] }
  0x61   :  { %546 = vperm.xlu0 %3230, %v133_v62   ;;  %v179_v43 = vadd.f32 %v178_v38, %v3792_v32  ;;  %v216_v46 = vadd.f32 %v215_v41, %v201_v36 }
  0x63   :  { %v180_v47 = vrot.slane %v179_v43, 4  ;;  %v217_v48 = vadd.f32 %v216_v46, %v202_v40 }
  0x64   :  { %561 = vperm.xlu1 %3231, %v136_v6  }
  0x65   :  { %556 = vperm.xlu0 %3230, %v135_v9   ;;  %v181_v52 = vadd.f32 %v180_v47, %v179_v43  ;;  %v218_v53 = vrot.slane %v217_v48, 4 }
  0x67   :  { %v182_v57 = vrot.slane %v181_v52, 2  ;;  %v219_v58 = vadd.f32 %v218_v53, %v217_v48 }
  0x68   :  { %571 = vperm.xlu1 %3231, %v138_v17  }
  0x69   :  { %566 = vperm.xlu0 %3230, %v137_v20   ;;  %v183_v62 = vadd.f32 %v182_v57, %v181_v52  ;;  %v220_v63 = vrot.slane %v219_v58, 2 }
  0x6b   :  { %v184_v0 = vrot.slane %v183_v62, 1  ;;  %v221_v2 = vadd.f32 %v220_v63, %v219_v58 }
  0x6c   :  { %581 = vperm.xlu1 %3231, %v140_v31  }
  0x6d   :  { %576 = vperm.xlu0 %3230, %v139_v35   ;;  %v185_v3 = vadd.f32 %v184_v0, %v183_v62  ;;  %v222_v4 = vrot.slane %v221_v2, 1 }
  0x6f   :  { %v186_v5 = vmul.f32 0.010416667, %v185_v3  ;;  %v223_v6 = vadd.f32 %v222_v4, %v221_v2 }
  0x70   :  { %591 = vperm.xlu1 %3231, %v142_v42  }
  0x71   :  { %586 = vperm.xlu0 %3230, %v141_v45   ;;  %v224_v8 = vmul.f32 0.010416667, %v223_v6  ;;  %v225_v9 = vmul.f32 %v186_v5, %v186_v5 }
  0x73   :  { %v226_v10 = vsub.f32 %v224_v8, %v225_v9 }
  0x74   :  { %601 = vperm.xlu1 %3231, %v144_v50  }
  0x75   :  { %596 = vperm.xlu0 %3230, %v143_v51   ;;  %v227_v11 = vmax.f32 %v226_v10, 0.0 }
  0x77   :  { %v229_v13 = vadd.f32 1e-05, %v227_v11 }
  0x78   :  { %611 = vperm.xlu1 %3231, %v146_v54  }
  0x79   :  { %606 = vperm.xlu0 %3230, %v145_v56   ;;  %3240 = vrsqrt.f32 %v229_v13 }
  0x7c   :  { %621 = vperm.xlu1 %3231, %v148_v59  }
  0x7d   :  { %616 = vperm.xlu0 %3230, %v147_v61  }
  0x86   :  { %v3241_v15 = vpop.eup %3240 }
  0x87   :  { %v231_v17 = vmul.f32 %v3241_v15, %v228_v16 }
  0x89   :  { %v233_v20 = vmul.f32 %v231_v17, %v186_v5  ;;  %v3837_v29 = vrot.slane %v231_v17, %v3831_v21 }
  0x8b   :  { %v234_v28 = vsub.f32 %v232_v24, %v233_v20  ;;  %v243_v30 = vmul.f32 %v3837_v29, %v3635_v25  ;;  %v244_v34 = vmul.f32 %v3837_v29, %v3640_v26  ;;  %v241_v35 = vmul.f32 %v3837_v29, %v3622_v22 }
  0x8c   :  { %v242_v36 = vmul.f32 %v3837_v29, %v3627_v23  ;;  %v246_v41 = vmul.f32 %v3837_v29, %v3673_v39  ;;  %v245_v22 = vmul.f32 %v3837_v29, %v3659_v33  ;;  %v248_v39 = vmul.f32 %v3837_v29, %v3695_v49 }
  0x8d   :  { %v3842_v31 = vrot.slane %v234_v28, %v3831_v21  ;;  %v247_v51 = vmul.f32 %v3837_v29, %v3684_v44  ;;  %v250_v58 = vmul.f32 %v3837_v29, %v3720_v60  ;;  %v249_v61 = vmul.f32 %v3837_v29, %v3709_v55 }
  0x8e   :  { %v252_v3 = vmul.f32 %v3837_v29, %v3745_v7  ;;  %v251_v5 = vmul.f32 %v3837_v29, %v3731_v1  ;;  %v254_v11 = vmul.f32 %v3837_v29, %v3770_v18  ;;  %v253_v14 = vmul.f32 %v3837_v29, %v3756_v12 }
  0x8f   :  { %v265_v38 = vadd.f32 %v3842_v31, %v243_v30  ;;  %v266_v25 = vadd.f32 %v3842_v31, %v244_v34  ;;  %v263_v42 = vadd.f32 %v3842_v31, %v241_v35  ;;  %v264_v26 = vadd.f32 %v3842_v31, %v242_v36 }
  0x90   :  { %v268_v47 = vadd.f32 %v3842_v31, %v246_v41  ;;  %v267_v50 = vadd.f32 %v3842_v31, %v245_v22  ;;  %v270_v57 = vadd.f32 %v3842_v31, %v248_v39  ;;  %v269_v59 = vadd.f32 %v3842_v31, %v247_v51 }
  0x91   :  { %v272_v60 = vadd.f32 %v3842_v31, %v250_v58  ;;  %v271_v55 = vadd.f32 %v3842_v31, %v249_v61  ;;  %v274_v7 = vadd.f32 %v3842_v31, %v252_v3  ;;  %v273_v1 = vadd.f32 %v3842_v31, %v251_v5 }
  0x92   :  { %v276_v18 = vadd.f32 %v3842_v31, %v254_v11  ;;  %v256_v20 = vmul.f32 %v3837_v29, %v3792_v32  ;;  %v275_v12 = vadd.f32 %v3842_v31, %v253_v14  ;;  %v255_v28 = vmul.f32 %v3837_v29, %v3781_v27 }
  0x94   :  { %v278_v32 = vadd.f32 %v3842_v31, %v256_v20 }
  0xbb   :  { %v3850_v37 = vpop.permute.xlu1 %291 }
  0xbc   :  { %v3853_v40 = vpop.permute.xlu0 %281  ;;  %v3865_v23 = vmul.f32 %v3850_v37, %v265_v38 }
  0xbd   :  { %v3876_v48 = vmul.f32 %v3853_v40, %v263_v42 }
  0xbe   :  { %4625 = vst [vmem:[#allocation23_spill] sm:$0xff] %v3865_v23 }
  0xbf   :  { %v3862_v43 = vpop.permute.xlu1 %296 }
  0xc0   :  { %v3868_v45 = vmul.f32 %v3862_v43, %v266_v25  ;;  %v3870_v46 = vpop.permute.xlu0 %286  ;;  %v277_v25 = vadd.f32 %v3842_v31, %v255_v28 }
  0xc1   :  { %v3879_v33 = vmul.f32 %v3870_v46, %v264_v26 }
  0xc2   :  { %4626 = vst [vmem:[#allocation24_spill] sm:$0xff] %v3868_v45  ;;  %v376_v52 = vpack.c.bf16 %v3868_v45, %v3865_v23 }
  0xc3   :  { %v3886_v53 = vpop.permute.xlu1 %306  ;;  %v375_v54 = vpack.c.bf16 %v3879_v33, %v3876_v48 }
  0xc4   :  { %v3891_v49 = vmul.f32 %v3886_v53, %v268_v47  ;;  %v3893_v56 = vpop.permute.xlu0 %301 }
  0xc5   :  { %v3899_v44 = vmul.f32 %v3893_v56, %v267_v50  ;;  %2996 = vmatprep.mubr.bf16.mxu0 %v375_v54 }
  0xc6   :  { %4627 = vst [vmem:[#allocation25_spill] sm:$0xff] %v3891_v49  ;;  %2997 = vmatmul.mubr.bf16.vlgmr.msra.gmra.mxu0 %v376_v52 }
  0xc7   :  { %4628 = vst [vmem:[#allocation26_spill] sm:$0xff] %v3899_v44  ;;  %v377_v62 = vpack.c.bf16 %v3891_v49, %v3899_v44  ;;  %v3906_v63 = vpop.permute.xlu1 %316 }
  0xc8   :  { %v3909_v0 = vmul.f32 %v3906_v63, %v270_v57  ;;  %v3911_v2 = vpop.permute.xlu0 %311 }
  0xc9   :  { %v3917_v4 = vmul.f32 %v3911_v2, %v269_v59  ;;  %3000 = vmatprep.mubr.bf16.mxu0 %v377_v62 }
  0xca   :  { %4629 = vst [vmem:[#allocation27_spill] sm:$0xff] %v3909_v0 }
  0xcb   :  { %4630 = vst [vmem:[#allocation28_spill] sm:$0xff] %v3917_v4  ;;  %v378_v6 = vpack.c.bf16 %v3909_v0, %v3917_v4  ;;  %v3924_v8 = vpop.permute.xlu1 %326 }
  0xcc   :  { %v3927_v9 = vmul.f32 %v3924_v8, %v272_v60  ;;  %v3929_v10 = vpop.permute.xlu0 %321 }
  0xcd   :  { %v3935_v13 = vmul.f32 %v3929_v10, %v271_v55 }
  0xce   :  { %4631 = vst [vmem:[#allocation29_spill] sm:$0xff] %v3927_v9  ;;  %3001 = vmatmul.mubr.bf16.gmra.mxu0 %v378_v6 }
  0xcf   :  { %4632 = vst [vmem:[#allocation30_spill] sm:$0xff] %v3935_v13  ;;  %v379_v15 = vpack.c.bf16 %v3927_v9, %v3935_v13  ;;  %v3942_v16 = vpop.permute.xlu1 %336 }
  0xd0   :  { %v3945_v17 = vmul.f32 %v3942_v16, %v274_v7  ;;  %v3947_v19 = vpop.permute.xlu0 %331 }
  0xd1   :  { %v3953_v24 = vmul.f32 %v3947_v19, %v273_v1  ;;  %3004 = vmatprep.mubr.bf16.mxu0 %v379_v15 }
  0xd2   :  { %4633 = vst [vmem:[#allocation31_spill] sm:$0xff] %v3945_v17 }
  0xd3   :  { %4634 = vst [vmem:[#allocation32_spill] sm:$0xff] %v3953_v24  ;;  %v380_v30 = vpack.c.bf16 %v3945_v17, %v3953_v24  ;;  %v3960_v34 = vpop.permute.xlu1 %346 }
  0xd4   :  { %v3963_v35 = vmul.f32 %v3960_v34, %v276_v18  ;;  %v3965_v36 = vpop.permute.xlu0 %341 }
  0xd5   :  { %v3969_v38 = vmul.f32 %v3965_v36, %v275_v12 }
  0xd6   :  { %4635 = vst [vmem:[#allocation33_spill] sm:$0xff] %v3963_v35  ;;  %3005 = vmatmul.mubr.bf16.gmra.mxu0 %v380_v30 }
  0xd7   :  { %4636 = vst [vmem:[#allocation34_spill] sm:$0xff] %v3969_v38  ;;  %v381_v27 = vpack.c.bf16 %v3963_v35, %v3969_v38  ;;  %v3974_v29 = vpop.permute.xlu1 %356 }
  0xd8   :  { %v3977_v41 = vmul.f32 %v3974_v29, %v278_v32  ;;  %v3979_v42 = vpop.permute.xlu0 %351 }
  0xd9   :  { %v3982_v26 = vmul.f32 %v3979_v42, %v277_v25  ;;  %3008 = vmatprep.mubr.bf16.mxu0 %v381_v27 }
  0xda   :  { %4637 = vst [vmem:[#allocation35_spill] sm:$0xff] %v3977_v41 }
  0xdb   :  { %4638 = vst [vmem:[#allocation36_spill] sm:$0xff] %v3982_v26  ;;  %v382_v22 = vpack.c.bf16 %v3977_v41, %v3982_v26  ;;  %v3986_v31 = vpop.permute.xlu1 %551 }
  0xdc   :  { %v3988_v47 = vpop.permute.xlu0 %546 }
  0xde   :  { %3009 = vmatmul.mubr.bf16.gmra.mxu0 %v382_v22 }
  0xdf   :  { %v3990_v39 = vpop.permute.xlu1 %561 }
  0xe0   :  { %v3992_v50 = vpop.permute.xlu0 %556 }
  0xe3   :  { %v3994_v51 = vpop.permute.xlu1 %571 }
  0xe4   :  { %v3996_v52 = vpop.permute.xlu0 %566 }
  0xe7   :  { %v3998_v58 = vpop.permute.xlu1 %581 }
  0xe8   :  { %v4000_v59 = vpop.permute.xlu0 %576 }
  0xeb   :  { %v4016_v11 = vpop.permute.xlu1 %591 }
  0xec   :  { %v4020_v14 = vpop.permute.xlu0 %586 }
  0xef   :  { %v4028_v30 = vpop.permute.xlu1 %601 }
  0xf0   :  { %v4038_v22 = vpop.permute.xlu0 %596 }
 0x186   :  { %v2998_v54 = vpop.f32.mrf.mxu0 }
 0x187   :  { %v4003_v62 = vmul.f32 %v2998_v54, %v3992_v50 }
 0x188   :  { %v481_v57 = vpop.f32.mrf.mxu0 }
 0x189   :  { %v4009_v55 = vmul.f32 %v3988_v47, %v481_v57 }
 0x18a   :  { %v2999_v61 = vpop.f32.mrf.mxu0 }
 0x18b   :  { %v4006_v60 = vmul.f32 %v2999_v61, %v3990_v39 }
 0x18c   :  { %v484_v3 = vpop.f32.mrf.mxu0 }
 0x18d   :  { %v2782_v5 = vpack.c.bf16 %v4006_v60, %v4003_v62  ;;  %v4014_v6 = vmul.f32 %v3986_v31, %v484_v3 }
 0x18e   :  { %v3002_v7 = vpop.f32.mrf.mxu0 }
 0x18f   :  { %2854 = vst [vmem:[#allocation4 + $0x8] sm:$0xff] %v2782_v5   ;;  %v2777_v1 = vpack.c.bf16 %v4014_v6, %v4009_v55  ;;  %v4023_v20 = vmul.f32 %v3002_v7, %v4000_v59  ;;  %v4042_v5 = vpop.permute.xlu1 %611 }
 0x190   :  { %v497_v15 = vpop.f32.mrf.mxu0 }
 0x191   :  { %2778 = vst [vmem:[#allocation4] sm:$0xff] %v2777_v1   ;;  %v4031_v32 = vmul.f32 %v3996_v52, %v497_v15  ;;  %v4050_v15 = vpop.permute.xlu0 %606 }
 0x192   :  { %v3003_v18 = vpop.f32.mrf.mxu0 }
 0x193   :  { %v4026_v12 = vmul.f32 %v3003_v18, %v3998_v58 }
 0x194   :  { %v500_v28 = vpop.f32.mrf.mxu0 }
 0x195   :  { %v2792_v25 = vpack.c.bf16 %v4026_v12, %v4023_v20  ;;  %v4036_v27 = vmul.f32 %v3994_v51, %v500_v28  ;;  %v4064_v35 = vpop.permute.xlu0 %616 }
 0x196   :  { %v3006_v54 = vpop.f32.mrf.mxu0 }
 0x197   :  { %2856 = vst [vmem:[#allocation4 + $0x18] sm:$0xff] %v2792_v25   ;;  %v2787_v57 = vpack.c.bf16 %v4036_v27, %v4031_v32  ;;  %v4045_v7 = vmul.f32 %v3006_v54, %v4038_v22 }
 0x198   :  { %v513_v61 = vpop.f32.mrf.mxu0 }
 0x199   :  { %2855 = vst [vmem:[#allocation4 + $0x10] sm:$0xff] %v2787_v57   ;;  %v4053_v28 = vmul.f32 %v4020_v14, %v513_v61 }
 0x19a   :  { %v3007_v3 = vpop.f32.mrf.mxu0 }
 0x19b   :  { %v4048_v1 = vmul.f32 %v3007_v3, %v4028_v30  ;;  %v4062_v3 = vpop.permute.xlu1 %621 }
 0x19c   :  { %v516_v18 = vpop.f32.mrf.mxu0 }
 0x19d   :  { %v2802_v25 = vpack.c.bf16 %v4048_v1, %v4045_v7  ;;  %v4058_v57 = vmul.f32 %v4016_v11, %v516_v18 }
 0x19e   :  { %v3010_v41 = vpop.f32.mrf.mxu0 }
 0x19f   :  { %2858 = vst [vmem:[#allocation4 + $0x28] sm:$0xff] %v2802_v25   ;;  %v2797_v54 = vpack.c.bf16 %v4058_v57, %v4053_v28  ;;  %v4067_v61 = vmul.f32 %v3010_v41, %v4064_v35 }
 0x1a0   :  { %v529_v26 = vpop.f32.mrf.mxu0 }
 0x1a1   :  { %2857 = vst [vmem:[#allocation4 + $0x20] sm:$0xff] %v2797_v54   ;;  %v4073_v24 = vmul.f32 %v4050_v15, %v529_v26 }
 0x1a2   :  { %v3011_v38 = vpop.f32.mrf.mxu0 }
 0x1a3   :  { %v4070_v17 = vmul.f32 %v3011_v38, %v4062_v3 }
 0x1a4   :  { %v532_v18 = vpop.f32.mrf.mxu0 }
 0x1a5   :  { %v2812_v25 = vpack.c.bf16 %v4070_v17, %v4067_v61  ;;  %v4078_v0 = vmul.f32 %v4042_v5, %v532_v18 }
 0x1a7   :  { %2860 = vst [vmem:[#allocation4 + $0x38] sm:$0xff] %v2812_v25   ;;  %v2807_v54 = vpack.c.bf16 %v4078_v0, %v4073_v24 }
 0x1a9   :  { %2859 = vst [vmem:[#allocation4 + $0x30] sm:$0xff] %v2807_v54  }
 0x1aa   :  { %776 = vsyncadd [#allocation3], 1024 }
 0x1ab   :  { %3416 = dma.done.wait [#allocation3], 1024 }
 0x1ac   :  { %3417 = vsyncadd [#allocation3], 4294966272  ;;  %v1370_v38 = vld [vmem:[%s4621_s24] sm:$0xff]  ;;  %v1372_v41 = vld [vmem:[%s4621_s24 + $0x8] sm:$0xff] }
 0x1ad   :  { %v1374_v26 = vld [vmem:[%s4621_s24 + $0x10] sm:$0xff]  ;;  %1371 = vst [vmem:[#allocation2 + $0x40] sm:$0xff] %v1370_v38  ;;  %1373 = vst [vmem:[#allocation2 + $0x48] sm:$0xff] %v1372_v41  ;;  %v1376_v18 = vld [vmem:[%s4621_s24 + $0x18] sm:$0xff] }
 0x1ae   :  { %1375 = vst [vmem:[#allocation2 + $0x50] sm:$0xff] %v1374_v26  ;;  %v1378_v25 = vld [vmem:[%s4621_s24 + $0x20] sm:$0xff]  ;;  %v1380_v54 = vld [vmem:[%s4621_s24 + $0x28] sm:$0xff]  ;;  %1377 = vst [vmem:[#allocation2 + $0x58] sm:$0xff] %v1376_v18 }
 0x1af   :  { %1379 = vst [vmem:[#allocation2 + $0x60] sm:$0xff] %v1378_v25  ;;  %1381 = vst [vmem:[#allocation2 + $0x68] sm:$0xff] %v1380_v54  ;;  %v1382_v38 = vld [vmem:[%s4621_s24 + $0x30] sm:$0xff]  ;;  %v1384_v41 = vld [vmem:[%s4621_s24 + $0x38] sm:$0xff] }
 0x1b0   :  { %1383 = vst [vmem:[#allocation2 + $0x70] sm:$0xff] %v1382_v38  ;;  %1385 = vst [vmem:[#allocation2 + $0x78] sm:$0xff] %v1384_v41  ;;  %v3242_v26 = vld [vmem:[#allocation4 + $0x38] sm:$0xff]   ;;  %v3243_v4 = vld [vmem:[#allocation4 + $0x30] sm:$0xff]  }
 0x1b1   :  { %3012 = vmatprep.subr.bf16.mxu1 %v3242_v26  ;;  %v3244_v9 = vld [vmem:[#allocation4 + $0x28] sm:$0xff]   ;;  %v3245_v18 = vld [vmem:[#allocation4 + $0x20] sm:$0xff]   ;;  %v3246_v54 = vld [vmem:[#allocation4 + $0x18] sm:$0xff]  }
 0x1b2   :  { %3013 = vmatpush3.bf16.msra.mxu1 %v3242_v26  ;;  %v3250_v25 = vld [vmem:[#allocation2] sm:$0xff]   ;;  %v3247_v13 = vld [vmem:[#allocation4 + $0x10] sm:$0xff]   ;;  %v3248_v38 = vld [vmem:[#allocation4 + $0x8] sm:$0xff]  }
 0x1b3   :  { %3014 = vmatprep.subr.bf16.mxu1 %v3243_v4  ;;  %3028 = vmatprep.mubr.bf16.mxu1 %v3250_v25  ;;  %v3249_v41 = vld [vmem:[#allocation4] sm:$0xff]   ;;  %v3251_v26 = vld [vmem:[#allocation2 + $0x8] sm:$0xff]   ;;  %v3253_v25 = vld [vmem:[#allocation2 + $0x18] sm:$0xff]  }
 0x1b4   :  { %v3256_v49 = vld [vmem:[#allocation2 + $0x30] sm:$0xff]  }
 0x1b6   :  { %3015 = vmatpush3.bf16.msra.mxu1 %v3243_v4  ;;  %v3252_v4 = vld [vmem:[#allocation2 + $0x10] sm:$0xff]  }
 0x1b7   :  { %3016 = vmatprep.subr.bf16.mxu1 %v3244_v9 }
 0x1ba   :  { %3017 = vmatpush3.bf16.msra.mxu1 %v3244_v9  ;;  %v3254_v9 = vld [vmem:[#allocation2 + $0x20] sm:$0xff]  }
 0x1bb   :  { %3018 = vmatprep.subr.bf16.mxu1 %v3245_v18 }
 0x1be   :  { %3019 = vmatpush3.bf16.msra.mxu1 %v3245_v18  ;;  %v3255_v18 = vld [vmem:[#allocation2 + $0x28] sm:$0xff]  }
 0x1bf   :  { %3020 = vmatprep.subr.bf16.mxu1 %v3246_v54 }
 0x1c2   :  { %3021 = vmatpush3.bf16.msra.mxu1 %v3246_v54  ;;  %v3257_v54 = vld [vmem:[#allocation2 + $0x38] sm:$0xff]  }
 0x1c3   :  { %3022 = vmatprep.subr.bf16.mxu1 %v3247_v13 }
 0x1c6   :  { %3023 = vmatpush3.bf16.msra.mxu1 %v3247_v13 }
 0x1c7   :  { %3024 = vmatprep.subr.bf16.mxu1 %v3248_v38 }
 0x1ca   :  { %3025 = vmatpush3.bf16.msra.mxu1 %v3248_v38 }
 0x1cb   :  { %3026 = vmatprep.subr.bf16.mxu1 %v3249_v41 }
 0x1ce   :  { %3027 = vmatpush3.bf16.msra.mxu1 %v3249_v41 }
 0x1d1   :  { %3029 = vmatmul.mubr.bf16.vlgmr.msra.gmra.mxu1 %v3251_v26  ;;  %v4112_v26 = vld [vmem:[%s4586_s7] ss:$0 sm:$0xff] }
 0x1d2   :  { %3032 = vmatprep.mubr.bf16.mxu1 %v3252_v4 }
 0x1d9   :  { %3033 = vmatmul.mubr.bf16.gmra.mxu1 %v3253_v25 }
 0x1da   :  { %3036 = vmatprep.mubr.bf16.mxu1 %v3254_v9 }
 0x1e1   :  { %3037 = vmatmul.mubr.bf16.gmra.mxu1 %v3255_v18 }
 0x1e2   :  { %3040 = vmatprep.mubr.bf16.mxu1 %v3256_v49 }
 0x1e9   :  { %3041 = vmatmul.mubr.bf16.gmra.mxu1 %v3257_v54 }
 0x291   :  { %v3030_v13 = vpop.f32.mrf.mxu1 }
 0x292   :  { %v1040_v44 = vadd.f32 %v3030_v13, %v4003_v62 }
 0x293   :  { %v943_v38 = vpop.f32.mrf.mxu1 }
 0x294   :  { %v1056_v45 = vmul.f32 %v1040_v44, %v3992_v50  ;;  %v1038_v41 = vadd.f32 %v943_v38, %v4009_v55 }
 0x295   :  { %v3031_v4 = vpop.f32.mrf.mxu1 }
 0x296   :  { %v1054_v25 = vmul.f32 %v1038_v41, %v3988_v47  ;;  %v1041_v49 = vadd.f32 %v3031_v4, %v4006_v60  ;;  %v1079_v18 = vadd.f32 %v4112_v26, %v1056_v45 }
 0x297   :  { %v946_v9 = vpop.f32.mrf.mxu1 }
 0x298   :  { %v1077_v62 = vadd.f32 %v4112_v26, %v1054_v25  ;;  %v1057_v54 = vmul.f32 %v1041_v49, %v3990_v39  ;;  %v1039_v44 = vadd.f32 %v946_v9, %v4014_v6  ;;  %v1095_v41 = vmax.f32 %v1079_v18, 0.0 }
 0x299   :  { %v3034_v50 = vpop.f32.mrf.mxu1 }
 0x29a   :  { %v1093_v55 = vmax.f32 %v1077_v62, 0.0  ;;  %v1080_v13 = vadd.f32 %v4112_v26, %v1057_v54  ;;  %v1055_v38 = vmul.f32 %v1039_v44, %v3986_v31  ;;  %v1044_v23 = vadd.f32 %v3034_v50, %v4023_v20 }
 0x29b   :  { %v959_v47 = vpop.f32.mrf.mxu1  ;;  %v4133_v18 = vmul.f32 %v1095_v41, %v3850_v37 }
 0x29c   :  { %v1078_v60 = vadd.f32 %v4112_v26, %v1055_v38  ;;  %v4125_v45 = vmul.f32 %v1093_v55, %v3853_v40  ;;  %v1096_v4 = vmax.f32 %v1080_v13, 0.0  ;;  %v1060_v39 = vmul.f32 %v1044_v23, %v4000_v59 }
 0x29d   :  { %v1042_v6 = vadd.f32 %v959_v47, %v4031_v32  ;;  %v3035_v25 = vpop.f32.mrf.mxu1 }
 0x29e   :  { %v1094_v49 = vmax.f32 %v1078_v60, 0.0  ;;  %v1045_v9 = vadd.f32 %v3035_v25, %v4026_v12  ;;  %v1083_v31 = vadd.f32 %v4112_v26, %v1060_v39  ;;  %v1147_v59 = vmul.f32 %v4125_v45, %v4125_v45 }
 0x29f   :  { %v1058_v20 = vmul.f32 %v1042_v6, %v3996_v52  ;;  %v962_v62 = vpop.f32.mrf.mxu1  ;;  %v4143_v12 = vmul.f32 %v1096_v4, %v3862_v43  ;;  %v1149_v4 = vmul.f32 %v4133_v18, %v4133_v18 }
 0x2a0   :  { %v4136_v54 = vmul.f32 %v1094_v49, %v3870_v46  ;;  %v1061_v44 = vmul.f32 %v1045_v9, %v3998_v58  ;;  %v1043_v23 = vadd.f32 %v962_v62, %v4036_v27  ;;  %v1099_v32 = vmax.f32 %v1083_v31, 0.0 }
 0x2a1   :  { %v1081_v52 = vadd.f32 %v4112_v26, %v1058_v20  ;;  %v3038_v50 = vpop.f32.mrf.mxu1 }
 0x2a2   :  { %v1125_v55 = vadd.f32 %v4136_v54, %v4125_v45  ;;  %v1148_v13 = vmul.f32 %v4136_v54, %v4136_v54  ;;  %v1084_v58 = vadd.f32 %v4112_v26, %v1061_v44  ;;  %v1059_v27 = vmul.f32 %v1043_v23, %v3994_v51 }
 0x2a3   :  { %v4153_v38 = vmul.f32 %v1099_v32, %v3911_v2  ;;  %v1097_v47 = vmax.f32 %v1081_v52, 0.0  ;;  %v1048_v41 = vadd.f32 %v3038_v50, %v4045_v7  ;;  %v975_v60 = vpop.f32.mrf.mxu1  ;;  %v1150_v7 = vmul.f32 %v4143_v12, %v4143_v12 }
 0x2a4   :  { %v1126_v39 = vadd.f32 %v1125_v55, %v4133_v18  ;;  %v1163_v6 = vadd.f32 %v1148_v13, %v1147_v59  ;;  %v1082_v25 = vadd.f32 %v4112_v26, %v1059_v27  ;;  %v1100_v9 = vmax.f32 %v1084_v58, 0.0 }
 0x2a5   :  { %v4161_v49 = vmul.f32 %v1097_v47, %v3893_v56  ;;  %v1064_v51 = vmul.f32 %v1048_v41, %v4038_v22  ;;  %v1046_v31 = vadd.f32 %v975_v60, %v4053_v28  ;;  %v3039_v20 = vpop.f32.mrf.mxu1  ;;  %v1153_v59 = vmul.f32 %v4153_v38, %v4153_v38 }
 0x2a6   :  { %v1164_v62 = vadd.f32 %v1163_v6, %v1149_v4  ;;  %v1127_v44 = vadd.f32 %v1126_v39, %v4143_v12  ;;  %v1098_v23 = vmax.f32 %v1082_v25, 0.0  ;;  %v1049_v50 = vadd.f32 %v3039_v20, %v4048_v1 }
 0x2a7   :  { %v1087_v32 = vadd.f32 %v4112_v26, %v1064_v51  ;;  %v1062_v52 = vmul.f32 %v1046_v31, %v4020_v14  ;;  %v978_v22 = vpop.f32.mrf.mxu1  ;;  %v1151_v55 = vmul.f32 %v4161_v49, %v4161_v49  ;;  %v4180_v27 = vmul.f32 %v1100_v9, %v3906_v63 }
 0x2a8   :  { %v1128_v28 = vadd.f32 %v1127_v44, %v4161_v49  ;;  %v1165_v13 = vadd.f32 %v1164_v62, %v1150_v7  ;;  %v4177_v58 = vmul.f32 %v1098_v23, %v3886_v53  ;;  %v1065_v41 = vmul.f32 %v1049_v50, %v4028_v30 }
 0x2a9   :  { %v1085_v47 = vadd.f32 %v4112_v26, %v1062_v52  ;;  %v1047_v14 = vadd.f32 %v978_v22, %v4058_v57  ;;  %v3042_v1 = vpop.f32.mrf.mxu1  ;;  %v1103_v25 = vmax.f32 %v1087_v32, 0.0  ;;  %v1154_v44 = vmul.f32 %v4180_v27, %v4180_v27 }
 0x2aa   :  { %v1166_v60 = vadd.f32 %v1165_v13, %v1151_v55  ;;  %v1129_v4 = vadd.f32 %v1128_v28, %v4177_v58  ;;  %v1152_v39 = vmul.f32 %v4177_v58, %v4177_v58  ;;  %v1052_v6 = vadd.f32 %v3042_v1, %v4067_v61 }
 0x2ab   :  { %v1101_v51 = vmax.f32 %v1085_v47, 0.0  ;;  %v1088_v9 = vadd.f32 %v4112_v26, %v1065_v41  ;;  %v1063_v31 = vmul.f32 %v1047_v14, %v4016_v11  ;;  %v991_v20 = vpop.f32.mrf.mxu1  ;;  %v4203_v28 = vmul.f32 %v1103_v25, %v3947_v19 }
 0x2ac   :  { %v1130_v30 = vadd.f32 %v1129_v4, %v4153_v38  ;;  %v1167_v7 = vadd.f32 %v1166_v60, %v1152_v39  ;;  %v1068_v57 = vmul.f32 %v1052_v6, %v4064_v35  ;;  %v1050_v62 = vadd.f32 %v991_v20, %v4073_v24 }
 0x2ad   :  { %v4197_v23 = vmul.f32 %v1101_v51, %v3929_v10  ;;  %v1086_v61 = vadd.f32 %v4112_v26, %v1063_v31  ;;  %v3043_v32 = vpop.f32.mrf.mxu1  ;;  %v1104_v50 = vmax.f32 %v1088_v9, 0.0  ;;  %v1157_v31 = vmul.f32 %v4203_v28, %v4203_v28 }
 0x2ae   :  { %v1168_v52 = vadd.f32 %v1167_v7, %v1153_v59  ;;  %v1131_v11 = vadd.f32 %v1130_v30, %v4180_v27  ;;  %v1066_v22 = vmul.f32 %v1050_v62, %v4050_v15  ;;  %v1091_v24 = vadd.f32 %v4112_v26, %v1068_v57 }
 0x2af   :  { %v1102_v35 = vmax.f32 %v1086_v61, 0.0  ;;  %v1053_v55 = vadd.f32 %v3043_v32, %v4070_v17  ;;  %v994_v13 = vpop.f32.mrf.mxu1  ;;  %v1155_v41 = vmul.f32 %v4197_v23, %v4197_v23  ;;  %v4217_v39 = vmul.f32 %v1104_v50, %v3942_v16 }
 0x2b0   :  { %v1132_v47 = vadd.f32 %v1131_v11, %v4197_v23  ;;  %v1169_v59 = vadd.f32 %v1168_v52, %v1154_v44  ;;  %v1089_v14 = vadd.f32 %v4112_v26, %v1066_v22  ;;  %v1051_v60 = vadd.f32 %v994_v13, %v4078_v0 }
 0x2b1   :  { %v4212_v1 = vmul.f32 %v1102_v35, %v3924_v8  ;;  %v1069_v15 = vmul.f32 %v1053_v55, %v4062_v3  ;;  %v1107_v3 = vmax.f32 %v1091_v24, 0.0  ;;  %v1158_v57 = vmul.f32 %v4217_v39, %v4217_v39 }
 0x2b2   :  { %v1170_v4 = vadd.f32 %v1169_v59, %v1155_v41  ;;  %v1105_v17 = vmax.f32 %v1089_v14, 0.0  ;;  %v1067_v9 = vmul.f32 %v1051_v60, %v4042_v5 }
 0x2b3   :  { %v1133_v6 = vadd.f32 %v1132_v47, %v4212_v1  ;;  %v1156_v25 = vmul.f32 %v4212_v1, %v4212_v1  ;;  %v1092_v51 = vadd.f32 %v4112_v26, %v1069_v15  ;;  %v1123_v5 = vmul.f32 %v1107_v3, %v3979_v42 }
 0x2b4   :  { %v1121_v30 = vmul.f32 %v1105_v17, %v3965_v36  ;;  %v1090_v7 = vadd.f32 %v4112_v26, %v1067_v9 }
 0x2b5   :  { %v1134_v0 = vadd.f32 %v1133_v6, %v4203_v28  ;;  %v1171_v20 = vadd.f32 %v1170_v4, %v1156_v25  ;;  %v1108_v61 = vmax.f32 %v1092_v51, 0.0  ;;  %v1161_v13 = vmul.f32 %v1123_v5, %v1123_v5 }
 0x2b6   :  { %v1106_v32 = vmax.f32 %v1090_v7, 0.0  ;;  %v1159_v11 = vmul.f32 %v1121_v30, %v1121_v30 }
 0x2b7   :  { %v1172_v62 = vadd.f32 %v1171_v20, %v1157_v31  ;;  %v1135_v44 = vadd.f32 %v1134_v0, %v4217_v39  ;;  %v1124_v24 = vmul.f32 %v1108_v61, %v3974_v29 }
 0x2b8   :  { %v1122_v22 = vmul.f32 %v1106_v32, %v3960_v34 }
 0x2b9   :  { %v1136_v52 = vadd.f32 %v1135_v44, %v1121_v30  ;;  %v1173_v50 = vadd.f32 %v1172_v62, %v1158_v57  ;;  %v1162_v59 = vmul.f32 %v1124_v24, %v1124_v24 }
 0x2ba   :  { %v1160_v26 = vmul.f32 %v1122_v22, %v1122_v22 }
 0x2bb   :  { %v1174_v35 = vadd.f32 %v1173_v50, %v1159_v11  ;;  %v1137_v55 = vadd.f32 %v1136_v52, %v1122_v22  ;;  %v1188_v50 = vld [vmem:[%s4587_s8] sm:$0x1] }
 0x2bd   :  { %v1138_v47 = vadd.f32 %v1137_v55, %v1123_v5  ;;  %v1175_v41 = vadd.f32 %v1174_v35, %v1160_v26  ;;  %v1192_v26 = vld [vmem:[%s4588_s9] sm:$0x1] }
 0x2bf   :  { %v1139_v14 = vadd.f32 %v1138_v47, %v1124_v24  ;;  %v1176_v15 = vadd.f32 %v1175_v41, %v1161_v13 }
 0x2c1   :  { %v1140_v60 = vrot.slane %v1139_v14, 4  ;;  %v1177_v4 = vadd.f32 %v1176_v15, %v1162_v59 }
 0x2c3   :  { %v1141_v17 = vadd.f32 %v1140_v60, %v1139_v14  ;;  %v1178_v6 = vrot.slane %v1177_v4, 4 }
 0x2c5   :  { %v1142_v25 = vrot.slane %v1141_v17, 2  ;;  %v1179_v51 = vadd.f32 %v1178_v6, %v1177_v4 }
 0x2c7   :  { %v1143_v9 = vadd.f32 %v1142_v25, %v1141_v17  ;;  %v1180_v31 = vrot.slane %v1179_v51, 2 }
 0x2c9   :  { %v1144_v3 = vrot.slane %v1143_v9, 1  ;;  %v1181_v0 = vadd.f32 %v1180_v31, %v1179_v51 }
 0x2cb   :  { %v1145_v20 = vadd.f32 %v1144_v3, %v1143_v9  ;;  %v1182_v7 = vrot.slane %v1181_v0, 1 }
 0x2cd   :  { %v1146_v57 = vmul.f32 0.010416667, %v1145_v20  ;;  %v1183_v62 = vadd.f32 %v1182_v7, %v1181_v0 }
 0x2cf   :  { %v1184_v44 = vmul.f32 0.010416667, %v1183_v62  ;;  %v1185_v61 = vmul.f32 %v1146_v57, %v1146_v57 }
 0x2d1   :  { %v1186_v32 = vsub.f32 %v1184_v44, %v1185_v61 }
 0x2d3   :  { %v1187_v52 = vmax.f32 %v1186_v32, 0.0 }
 0x2d5   :  { %v1189_v11 = vadd.f32 1e-05, %v1187_v52 }
 0x2d7   :  { %3258 = vrsqrt.f32 %v1189_v11 }
 0x2e4   :  { %v3259_v35 = vpop.eup %3258 }
 0x2e5   :  { %v1191_v55 = vmul.f32 %v3259_v35, %v1188_v50 }
 0x2e7   :  { %v1193_v13 = vmul.f32 %v1191_v55, %v1146_v57  ;;  %v1199_v47 = vrot.slane %v1191_v55, %v3831_v21 }
 0x2e9   :  { %v1194_v41 = vsub.f32 %v1192_v26, %v1193_v13  ;;  %v1201_v59 = vmul.f32 %v1199_v47, %v4125_v45  ;;  %v1202_v14 = vmul.f32 %v1199_v47, %v4136_v54  ;;  %v1203_v15 = vmul.f32 %v1199_v47, %v4133_v18 }
 0x2ea   :  { %v1204_v60 = vmul.f32 %v1199_v47, %v4143_v12  ;;  %v1205_v4 = vmul.f32 %v1199_v47, %v4161_v49  ;;  %v1206_v17 = vmul.f32 %v1199_v47, %v4177_v58  ;;  %v1207_v6 = vmul.f32 %v1199_v47, %v4153_v38 }
 0x2eb   :  { %v1208_v25 = vmul.f32 %v1199_v47, %v4180_v27  ;;  %v1209_v51 = vmul.f32 %v1199_v47, %v4197_v23  ;;  %v1210_v9 = vmul.f32 %v1199_v47, %v4212_v1  ;;  %v1211_v45 = vmul.f32 %v1199_v47, %v4203_v28 }
 0x2ec   :  { %v1212_v54 = vmul.f32 %v1199_v47, %v4217_v39  ;;  %v1221_v18 = vrot.slane %v1194_v41, %v3831_v21  ;;  %v1213_v31 = vmul.f32 %v1199_v47, %v1121_v30  ;;  %v1214_v12 = vmul.f32 %v1199_v47, %v1122_v22 }
 0x2ed   :  { %v1215_v3 = vmul.f32 %v1199_v47, %v1123_v5  ;;  %v1216_v49 = vmul.f32 %v1199_v47, %v1124_v24 }
 0x2ee   :  { %v1223_v0 = vadd.f32 %v1221_v18, %v1201_v59  ;;  %v1224_v58 = vadd.f32 %v1221_v18, %v1202_v14  ;;  %v1225_v20 = vadd.f32 %v1221_v18, %v1203_v15  ;;  %v1226_v38 = vadd.f32 %v1221_v18, %v1204_v60 }
 0x2ef   :  { %v1227_v7 = vadd.f32 %v1221_v18, %v1205_v4  ;;  %v1228_v27 = vadd.f32 %v1221_v18, %v1206_v17  ;;  %v1229_v57 = vadd.f32 %v1221_v18, %v1207_v6  ;;  %v1230_v23 = vadd.f32 %v1221_v18, %v1208_v25 }
 0x2f0   :  { %v1231_v62 = vadd.f32 %v1221_v18, %v1209_v51  ;;  %v1232_v1 = vadd.f32 %v1221_v18, %v1210_v9  ;;  %v1233_v44 = vadd.f32 %v1221_v18, %v1211_v45  ;;  %v1234_v28 = vadd.f32 %v1221_v18, %v1212_v54 }
 0x2f1   :  { %v1235_v61 = vadd.f32 %v1221_v18, %v1213_v31  ;;  %v1236_v39 = vadd.f32 %v1221_v18, %v1214_v12  ;;  %v1237_v32 = vadd.f32 %v1221_v18, %v1215_v3  ;;  %v1238_v52 = vadd.f32 %v1221_v18, %v1216_v49 }
 0x2f2   :  { %v1239_v30 = vmul.f32 %v1223_v0, %v3853_v40  ;;  %v1240_v5 = vmul.f32 %v1224_v58, %v3870_v46  ;;  %v1241_v22 = vmul.f32 %v1225_v20, %v3850_v37  ;;  %v1242_v24 = vmul.f32 %v1226_v38, %v3862_v43 }
 0x2f3   :  { %v1243_v11 = vmul.f32 %v1227_v7, %v3893_v56  ;;  %v1244_v50 = vmul.f32 %v1228_v27, %v3886_v53  ;;  %v1245_v35 = vmul.f32 %v1229_v57, %v3911_v2  ;;  %v1246_v55 = vmul.f32 %v1230_v23, %v3906_v63 }
 0x2f4   :  { %v1247_v26 = vmul.f32 %v1231_v62, %v3929_v10  ;;  %v1248_v13 = vmul.f32 %v1232_v1, %v3924_v8  ;;  %v1249_v47 = vmul.f32 %v1233_v44, %v3947_v19  ;;  %v1250_v41 = vmul.f32 %v1234_v28, %v3942_v16 }
 0x2f5   :  { %v1251_v59 = vmul.f32 %v1235_v61, %v3965_v36  ;;  %v1252_v14 = vmul.f32 %v1236_v39, %v3960_v34  ;;  %v1253_v15 = vmul.f32 %v1237_v32, %v3979_v42  ;;  %v1254_v60 = vmul.f32 %v1238_v52, %v3974_v29 }
 0x2f6   :  { %v4271_v4 = vpack.c.bf16 %v1240_v5, %v1239_v30  ;;  %v4273_v17 = vpack.c.bf16 %v1242_v24, %v1241_v22  ;;  %v4275_v6 = vpack.c.bf16 %v1244_v50, %v1243_v11  ;;  %v4277_v25 = vpack.c.bf16 %v1246_v55, %v1245_v35 }
 0x2f7   :  { %v4279_v51 = vpack.c.bf16 %v1248_v13, %v1247_v26  ;;  %v4281_v9 = vpack.c.bf16 %v1250_v41, %v1249_v47  ;;  %v4283_v45 = vpack.c.bf16 %v1252_v14, %v1251_v59  ;;  %v4285_v54 = vpack.c.bf16 %v1254_v60, %v1253_v15 }
 0x2f8   :  { %2818 = vst [vmem:[#allocation4] sm:$0xff] %v4271_v4   ;;  %2861 = vst [vmem:[#allocation4 + $0x8] sm:$0xff] %v4273_v17  }
 0x2f9   :  { %2862 = vst [vmem:[#allocation4 + $0x10] sm:$0xff] %v4275_v6   ;;  %2863 = vst [vmem:[#allocation4 + $0x18] sm:$0xff] %v4277_v25  }
 0x2fa   :  { %2864 = vst [vmem:[#allocation4 + $0x20] sm:$0xff] %v4279_v51   ;;  %2865 = vst [vmem:[#allocation4 + $0x28] sm:$0xff] %v4281_v9  }
 0x2fb   :  { %2866 = vst [vmem:[#allocation4 + $0x30] sm:$0xff] %v4283_v45   ;;  %2867 = vst [vmem:[#allocation4 + $0x38] sm:$0xff] %v4285_v54  }
 0x2fc   :  { %1393 = vsyncadd [#allocation3 + $0x1], 1024 }
 0x2fd   :  { %3418 = dma.done.wait [#allocation3 + $0x1], 1024 }
 0x2fe   :  { %3419 = vsyncadd [#allocation3 + $0x1], 4294966272  ;;  %v3268_v49 = vld [vmem:[#allocation2 + $0x40] sm:$0xff]   ;;  %v3278_v20 = vld [vmem:[#allocation9 + $0x38] sm:$0xff]  }
 0x2ff   :  { %3060 = vmatprep.mubr.bf16.mxu0 %v3268_v49  ;;  %v3266_v38 = vld [vmem:[#allocation4 + $0x8] sm:$0xff]   ;;  %3076 = vmatprep.subr.bf16.mxu1 %v3278_v20  ;;  %v3280_v7 = vld [vmem:[#allocation9 + $0x30] sm:$0xff]   ;;  %v3267_v57 = vld [vmem:[#allocation4] sm:$0xff]  }
 0x300   :  { %v3264_v0 = vld [vmem:[#allocation4 + $0x18] sm:$0xff]   ;;  %v3265_v58 = vld [vmem:[#allocation4 + $0x10] sm:$0xff]   ;;  %3077 = vmatpush3.bf16.msra.mxu1 %v3278_v20  ;;  %v3282_v27 = vld [vmem:[#allocation9 + $0x28] sm:$0xff]  }
 0x301   :  { %v3262_v12 = vld [vmem:[#allocation4 + $0x28] sm:$0xff]   ;;  %v3263_v3 = vld [vmem:[#allocation4 + $0x20] sm:$0xff]   ;;  %3078 = vmatprep.subr.bf16.mxu1 %v3280_v7  ;;  %v3276_v62 = vld [vmem:[#allocation6 + $0x38] sm:$0xff]  }
 0x302   :  { %v3260_v18 = vld [vmem:[#allocation4 + $0x38] sm:$0xff]   ;;  %v3261_v31 = vld [vmem:[#allocation4 + $0x30] sm:$0xff]   ;;  %v3284_v23 = vld [vmem:[#allocation9 + $0x20] sm:$0xff]  }
 0x303   :  { %3044 = vmatprep.subr.bf16.mxu0 %v3260_v18  ;;  %v3269_v1 = vld [vmem:[#allocation2 + $0x48] sm:$0xff]   ;;  %v3286_v44 = vld [vmem:[#allocation9 + $0x18] sm:$0xff]   ;;  %v3270_v28 = vld [vmem:[#allocation2 + $0x50] sm:$0xff]  }
 0x304   :  { %3045 = vmatpush3.bf16.msra.mxu0 %v3260_v18  ;;  %3079 = vmatpush3.bf16.msra.mxu1 %v3280_v7  ;;  %v3277_v61 = vld [vmem:[#allocation6 + $0x30] sm:$0xff]   ;;  %v3279_v32 = vld [vmem:[#allocation6 + $0x28] sm:$0xff]   ;;  %v3271_v52 = vld [vmem:[#allocation2 + $0x58] sm:$0xff]  }
 0x305   :  { %3046 = vmatprep.subr.bf16.mxu0 %v3261_v31  ;;  %3080 = vmatprep.subr.bf16.mxu1 %v3282_v27  ;;  %v3288_v39 = vld [vmem:[#allocation9 + $0x10] sm:$0xff]   ;;  %v3272_v30 = vld [vmem:[#allocation2 + $0x60] sm:$0xff]   ;;  %v3283_v22 = vld [vmem:[#allocation6 + $0x18] sm:$0xff]  }
 0x306   :  { %v3281_v5 = vld [vmem:[#allocation6 + $0x20] sm:$0xff]   ;;  %v3273_v24 = vld [vmem:[#allocation2 + $0x68] sm:$0xff]   ;;  %v3274_v11 = vld [vmem:[#allocation2 + $0x70] sm:$0xff]  }
 0x307   :  { %v3285_v50 = vld [vmem:[#allocation6 + $0x10] sm:$0xff]   ;;  %v3287_v35 = vld [vmem:[#allocation6 + $0x8] sm:$0xff]   ;;  %v3275_v55 = vld [vmem:[#allocation2 + $0x78] sm:$0xff]  }
 0x308   :  { %3047 = vmatpush3.bf16.msra.mxu0 %v3261_v31  ;;  %3081 = vmatpush3.bf16.msra.mxu1 %v3282_v27  ;;  %v3289_v26 = vld [vmem:[#allocation6] sm:$0xff]   ;;  %v3290_v13 = vld [vmem:[#allocation9 + $0x8] sm:$0xff]  }
 0x309   :  { %3048 = vmatprep.subr.bf16.mxu0 %v3262_v12  ;;  %3082 = vmatprep.subr.bf16.mxu1 %v3284_v23  ;;  %v3291_v47 = vld [vmem:[#allocation9] sm:$0xff]  }
 0x30c   :  { %3049 = vmatpush3.bf16.msra.mxu0 %v3262_v12  ;;  %3083 = vmatpush3.bf16.msra.mxu1 %v3284_v23  ;;  %v3293_v23 = vld [vmem:[#allocation11 + $0x30] sm:$0xff]  }
 0x30d   :  { %3050 = vmatprep.subr.bf16.mxu0 %v3263_v3  ;;  %3084 = vmatprep.subr.bf16.mxu1 %v3286_v44 }
 0x310   :  { %3051 = vmatpush3.bf16.msra.mxu0 %v3263_v3  ;;  %3085 = vmatpush3.bf16.msra.mxu1 %v3286_v44  ;;  %v3296_v44 = vld [vmem:[#allocation11 + $0x18] sm:$0xff]  }
 0x311   :  { %3052 = vmatprep.subr.bf16.mxu0 %v3264_v0  ;;  %3086 = vmatprep.subr.bf16.mxu1 %v3288_v39 }
 0x314   :  { %3053 = vmatpush3.bf16.msra.mxu0 %v3264_v0  ;;  %3087 = vmatpush3.bf16.msra.mxu1 %v3288_v39  ;;  %v3299_v39 = vld [vmem:[#allocation11] sm:$0xff]  }
 0x315   :  { %3054 = vmatprep.subr.bf16.mxu0 %v3265_v58  ;;  %3088 = vmatprep.subr.bf16.mxu1 %v3290_v13 }
 0x318   :  { %3055 = vmatpush3.bf16.msra.mxu0 %v3265_v58  ;;  %3089 = vmatpush3.bf16.msra.mxu1 %v3290_v13 }
 0x319   :  { %3056 = vmatprep.subr.bf16.mxu0 %v3266_v38  ;;  %3090 = vmatprep.subr.bf16.mxu1 %v3291_v47 }
 0x31c   :  { %3057 = vmatpush3.bf16.msra.mxu0 %v3266_v38  ;;  %3091 = vmatpush3.bf16.msra.mxu1 %v3291_v47 }
 0x31d   :  { %3058 = vmatprep.subr.bf16.mxu0 %v3267_v57 }
 0x320   :  { %3059 = vmatpush3.bf16.msra.mxu0 %v3267_v57  ;;  %v3292_v57 = vld [vmem:[#allocation11 + $0x38] sm:$0xff]  }
 0x321   :  { %3108 = vmatprep.subr.bf16.mxu0 %v3276_v62  ;;  %3140 = vmatprep.subr.bf16.mxu1 %v3292_v57 }
 0x323   :  { %3061 = vmatmul.mubr.bf16.vlgmr.msra.gmra.mxu0 %v3269_v1  ;;  %v3295_v1 = vld [vmem:[#allocation11 + $0x20] sm:$0xff]  }
 0x324   :  { %3064 = vmatprep.mubr.bf16.mxu0 %v3270_v28  ;;  %3109 = vmatpush3.bf16.msra.mxu0 %v3276_v62  ;;  %v3294_v62 = vld [vmem:[#allocation11 + $0x28] sm:$0xff]   ;;  %v3297_v28 = vld [vmem:[#allocation11 + $0x10] sm:$0xff]  }
 0x325   :  { %3110 = vmatprep.subr.bf16.mxu0 %v3277_v61 }
 0x328   :  { %3111 = vmatpush3.bf16.msra.mxu0 %v3277_v61  ;;  %v3298_v61 = vld [vmem:[#allocation11 + $0x8] sm:$0xff]  }
 0x329   :  { %3112 = vmatprep.subr.bf16.mxu0 %v3279_v32 }
 0x32b   :  { %3065 = vmatmul.mubr.bf16.gmra.mxu0 %v3271_v52 }
 0x32c   :  { %3068 = vmatprep.mubr.bf16.mxu0 %v3272_v30  ;;  %3113 = vmatpush3.bf16.msra.mxu0 %v3279_v32 }
 0x32d   :  { %3114 = vmatprep.subr.bf16.mxu0 %v3281_v5 }
 0x330   :  { %3115 = vmatpush3.bf16.msra.mxu0 %v3281_v5 }
 0x331   :  { %3116 = vmatprep.subr.bf16.mxu0 %v3283_v22 }
 0x333   :  { %3069 = vmatmul.mubr.bf16.gmra.mxu0 %v3273_v24 }
 0x334   :  { %3072 = vmatprep.mubr.bf16.mxu0 %v3274_v11  ;;  %3117 = vmatpush3.bf16.msra.mxu0 %v3283_v22 }
 0x335   :  { %3118 = vmatprep.subr.bf16.mxu0 %v3285_v50 }
 0x338   :  { %3119 = vmatpush3.bf16.msra.mxu0 %v3285_v50  ;;  %v4303_v50 = vld [vmem:[#allocation12 + $0x38] sm:$0xff]  }
 0x339   :  { %3120 = vmatprep.subr.bf16.mxu0 %v3287_v35 }
 0x33b   :  { %3073 = vmatmul.mubr.bf16.gmra.mxu0 %v3275_v55 }
 0x33c   :  { %3121 = vmatpush3.bf16.msra.mxu0 %v3287_v35  ;;  %3124 = vmatprep.mubr.bf16.mxu0 %v4271_v4  ;;  %v4305_v35 = vld [vmem:[#allocation12 + $0x30] sm:$0xff]  }
 0x33d   :  { %3122 = vmatprep.subr.bf16.mxu0 %v3289_v26 }
 0x340   :  { %3123 = vmatpush3.bf16.msra.mxu0 %v3289_v26  ;;  %v4311_v26 = vld [vmem:[#allocation12 + $0x28] sm:$0xff]  }
 0x341   :  { %3172 = vmatprep.subr.bf16.mxu0 %v4303_v50 }
 0x343   :  { %3125 = vmatmul.mubr.bf16.vlgmr.msra.gmra.mxu0 %v4273_v17 }
 0x344   :  { %3128 = vmatprep.mubr.bf16.mxu0 %v4275_v6  ;;  %3173 = vmatpush3.bf16.msra.mxu0 %v4303_v50 }
 0x345   :  { %3174 = vmatprep.subr.bf16.mxu0 %v4305_v35 }
 0x348   :  { %3175 = vmatpush3.bf16.msra.mxu0 %v4305_v35 }
 0x349   :  { %3176 = vmatprep.subr.bf16.mxu0 %v4311_v26 }
 0x34b   :  { %3129 = vmatmul.mubr.bf16.gmra.mxu0 %v4277_v25 }
 0x34c   :  { %3132 = vmatprep.mubr.bf16.mxu0 %v4279_v51  ;;  %3177 = vmatpush3.bf16.msra.mxu0 %v4311_v26 }
 0x353   :  { %3133 = vmatmul.mubr.bf16.gmra.mxu0 %v4281_v9 }
 0x354   :  { %3136 = vmatprep.mubr.bf16.mxu0 %v4283_v45 }
 0x35b   :  { %3137 = vmatmul.mubr.bf16.gmra.mxu0 %v4285_v54 }
 0x3e3   :  { %v3062_v41 = vpop.f32.mrf.mxu0 }
 0x3e5   :  { %v1558_v59 = vpop.f32.mrf.mxu0 }
 0x3e7   :  { %v3063_v14 = vpop.f32.mrf.mxu0 }
 0x3e8   :  { %v1670_v4 = vpack.c.bf16 %v3063_v14, %v3062_v41  ;;  %v4316_v41 = vld [vmem:[%s4591_s12] ss:$0 sm:$0xff] }
 0x3e9   :  { %v1561_v15 = vpop.f32.mrf.mxu0 }
 0x3ea   :  { %v1669_v60 = vpack.c.bf16 %v1561_v15, %v1558_v59 }
 0x3eb   :  { %v3066_v17 = vpop.f32.mrf.mxu0 }
 0x3ec   :  { %3092 = vmatprep.mubr.bf16.mxu1 %v1669_v60  ;;  %v4320_v60 = vld [vmem:[#allocation12 + $0x20] sm:$0xff]  }
 0x3ed   :  { %v1574_v6 = vpop.f32.mrf.mxu0  ;;  %3093 = vmatmul.mubr.bf16.vlgmr.msra.gmra.mxu1 %v1670_v4  ;;  %3178 = vmatprep.subr.bf16.mxu0 %v4320_v60 }
 0x3ee   :  { %3141 = vmatpush3.bf16.msra.mxu1 %v3292_v57  ;;  %3179 = vmatpush3.bf16.msra.mxu0 %v4320_v60 }
 0x3ef   :  { %v3067_v18 = vpop.f32.mrf.mxu0  ;;  %3142 = vmatprep.subr.bf16.mxu1 %v3293_v23 }
 0x3f0   :  { %v1672_v51 = vpack.c.bf16 %v3067_v18, %v3066_v17 }
 0x3f1   :  { %v1577_v25 = vpop.f32.mrf.mxu0 }
 0x3f2   :  { %v1671_v31 = vpack.c.bf16 %v1577_v25, %v1574_v6  ;;  %3143 = vmatpush3.bf16.msra.mxu1 %v3293_v23 }
 0x3f3   :  { %v3070_v12 = vpop.f32.mrf.mxu0  ;;  %3144 = vmatprep.subr.bf16.mxu1 %v3294_v62 }
 0x3f4   :  { %3096 = vmatprep.mubr.bf16.mxu1 %v1671_v31 }
 0x3f5   :  { %v1590_v9 = vpop.f32.mrf.mxu0  ;;  %3097 = vmatmul.mubr.bf16.gmra.mxu1 %v1672_v51 }
 0x3f6   :  { %3145 = vmatpush3.bf16.msra.mxu1 %v3294_v62 }
 0x3f7   :  { %v3071_v45 = vpop.f32.mrf.mxu0  ;;  %3146 = vmatprep.subr.bf16.mxu1 %v3295_v1 }
 0x3f8   :  { %v1674_v49 = vpack.c.bf16 %v3071_v45, %v3070_v12  ;;  %v4327_v45 = vld [vmem:[#allocation12 + $0x18] sm:$0xff]  }
 0x3f9   :  { %v1593_v54 = vpop.f32.mrf.mxu0  ;;  %3180 = vmatprep.subr.bf16.mxu0 %v4327_v45 }
 0x3fa   :  { %v1673_v3 = vpack.c.bf16 %v1593_v54, %v1590_v9  ;;  %3147 = vmatpush3.bf16.msra.mxu1 %v3295_v1  ;;  %3181 = vmatpush3.bf16.msra.mxu0 %v4327_v45 }
 0x3fb   :  { %v3074_v0 = vpop.f32.mrf.mxu0  ;;  %3148 = vmatprep.subr.bf16.mxu1 %v3296_v44 }
 0x3fc   :  { %3100 = vmatprep.mubr.bf16.mxu1 %v1673_v3 }
 0x3fd   :  { %v1606_v58 = vpop.f32.mrf.mxu0  ;;  %3101 = vmatmul.mubr.bf16.gmra.mxu1 %v1674_v49 }
 0x3fe   :  { %3149 = vmatpush3.bf16.msra.mxu1 %v3296_v44 }
 0x3ff   :  { %v3075_v20 = vpop.f32.mrf.mxu0  ;;  %3150 = vmatprep.subr.bf16.mxu1 %v3297_v28 }
 0x400   :  { %v1676_v27 = vpack.c.bf16 %v3075_v20, %v3074_v0 }
 0x401   :  { %v1609_v38 = vpop.f32.mrf.mxu0 }
 0x402   :  { %v1675_v7 = vpack.c.bf16 %v1609_v38, %v1606_v58  ;;  %3151 = vmatpush3.bf16.msra.mxu1 %v3297_v28 }
 0x403   :  { %3152 = vmatprep.subr.bf16.mxu1 %v3298_v61  ;;  %v3126_v32 = vpop.f32.mrf.mxu0 }
 0x404   :  { %3104 = vmatprep.mubr.bf16.mxu1 %v1675_v7 }
 0x405   :  { %3105 = vmatmul.mubr.bf16.gmra.mxu1 %v1676_v27  ;;  %v1920_v52 = vpop.f32.mrf.mxu0 }
 0x406   :  { %3153 = vmatpush3.bf16.msra.mxu1 %v3298_v61 }
 0x407   :  { %3154 = vmatprep.subr.bf16.mxu1 %v3299_v39  ;;  %v3127_v30 = vpop.f32.mrf.mxu0 }
 0x409   :  { %v1923_v5 = vpop.f32.mrf.mxu0 }
 0x40a   :  { %3155 = vmatpush3.bf16.msra.mxu1 %v3299_v39 }
 0x40b   :  { %v3130_v22 = vpop.f32.mrf.mxu0  ;;  %3204 = vmatprep.subr.bf16.mxu1 %v4303_v50 }
 0x40d   :  { %v1936_v24 = vpop.f32.mrf.mxu0 }
 0x40f   :  { %v3131_v11 = vpop.f32.mrf.mxu0 }
 0x411   :  { %v1939_v55 = vpop.f32.mrf.mxu0 }
 0x413   :  { %v3134_v14 = vpop.f32.mrf.mxu0 }
 0x415   :  { %v1952_v31 = vpop.f32.mrf.mxu0 }
 0x417   :  { %v3135_v7 = vpop.f32.mrf.mxu0 }
 0x4ad   :  { %v3094_v13 = vpop.f32.mrf.mxu1 }
 0x4ae   :  { %v1929_v47 = vadd.f32 %v3126_v32, %v3094_v13 }
 0x4af   :  { %v1775_v59 = vpop.f32.mrf.mxu1 }
 0x4b0   :  { %v1921_v15 = vadd.f32 %v1920_v52, %v1775_v59  ;;  %v1992_v17 = vadd.f32 %v4316_v41, %v1929_v47 }
 0x4b1   :  { %v3095_v4 = vpop.f32.mrf.mxu1 }
 0x4b2   :  { %v1990_v6 = vadd.f32 %v4316_v41, %v1921_v15  ;;  %v1932_v18 = vadd.f32 %v3127_v30, %v3095_v4  ;;  %v2008_v3 = vmax.f32 %v1992_v17, 0.0  ;;  %v1955_v30 = vpop.f32.mrf.mxu0 }
 0x4b3   :  { %v1778_v25 = vpop.f32.mrf.mxu1 }
 0x4b4   :  { %v2006_v51 = vmax.f32 %v1990_v6, 0.0  ;;  %v1993_v12 = vadd.f32 %v4316_v41, %v1932_v18  ;;  %v1924_v9 = vadd.f32 %v1923_v5, %v1778_v25  ;;  %v4336_v62 = vmul.f32 %v2008_v3, %v3850_v37 }
 0x4b5   :  { %v3098_v54 = vpop.f32.mrf.mxu1 }
 0x4b6   :  { %v1991_v49 = vadd.f32 %v4316_v41, %v1924_v9  ;;  %v4331_v0 = vmul.f32 %v2006_v51, %v3853_v40  ;;  %v2009_v58 = vmax.f32 %v1993_v12, 0.0  ;;  %v1945_v20 = vadd.f32 %v3130_v22, %v3098_v54  ;;  %v3138_v12 = vpop.f32.mrf.mxu0 }
 0x4b7   :  { %v1791_v38 = vpop.f32.mrf.mxu1  ;;  %v2062_v59 = vmul.f32 %v4336_v62, %v4336_v62 }
 0x4b8   :  { %v2007_v27 = vmax.f32 %v1991_v49, 0.0  ;;  %v1937_v57 = vadd.f32 %v1936_v24, %v1791_v38  ;;  %v2060_v61 = vmul.f32 %v4331_v0, %v4331_v0  ;;  %v4345_v39 = vmul.f32 %v2009_v58, %v3862_v43 }
 0x4b9   :  { %v3099_v23 = vpop.f32.mrf.mxu1  ;;  %v1996_v32 = vadd.f32 %v4316_v41, %v1945_v20 }
 0x4ba   :  { %v4339_v1 = vmul.f32 %v2007_v27, %v3870_v46  ;;  %v1994_v44 = vadd.f32 %v4316_v41, %v1937_v57  ;;  %v1948_v28 = vadd.f32 %v3131_v11, %v3099_v23  ;;  %v2063_v9 = vmul.f32 %v4345_v39, %v4345_v39 }
 0x4bb   :  { %v1794_v52 = vpop.f32.mrf.mxu1  ;;  %v2012_v6 = vmax.f32 %v1996_v32, 0.0  ;;  %v1968_v32 = vpop.f32.mrf.mxu0 }
 0x4bc   :  { %v2038_v5 = vadd.f32 %v4339_v1, %v4331_v0  ;;  %v2061_v22 = vmul.f32 %v4339_v1, %v4339_v1  ;;  %v2010_v24 = vmax.f32 %v1994_v44, 0.0  ;;  %v1997_v11 = vadd.f32 %v4316_v41, %v1948_v28 }
 0x4bd   :  { %v1940_v13 = vadd.f32 %v1939_v55, %v1794_v52  ;;  %v3102_v47 = vpop.f32.mrf.mxu1  ;;  %v4369_v44 = vmul.f32 %v2012_v6, %v3911_v2 }
 0x4be   :  { %v2039_v15 = vadd.f32 %v2038_v5, %v4336_v62  ;;  %v2076_v4 = vadd.f32 %v2061_v22, %v2060_v61  ;;  %v4358_v17 = vmul.f32 %v2010_v24, %v3893_v56  ;;  %v1961_v25 = vadd.f32 %v3134_v14, %v3102_v47 }
 0x4bf   :  { %v1995_v18 = vadd.f32 %v4316_v41, %v1940_v13  ;;  %v1807_v51 = vpop.f32.mrf.mxu1  ;;  %v2013_v3 = vmax.f32 %v1997_v11, 0.0  ;;  %v2066_v6 = vmul.f32 %v4369_v44, %v4369_v44 }
 0x4c0   :  { %v2077_v55 = vadd.f32 %v2076_v4, %v2062_v59  ;;  %v2040_v54 = vadd.f32 %v2039_v15, %v4345_v39  ;;  %v2064_v49 = vmul.f32 %v4358_v17, %v4358_v17  ;;  %v1953_v20 = vadd.f32 %v1952_v31, %v1807_v51  ;;  %v3139_v51 = vpop.f32.mrf.mxu0 }
 0x4c1   :  { %v2011_v58 = vmax.f32 %v1995_v18, 0.0  ;;  %v3103_v38 = vpop.f32.mrf.mxu1  ;;  %v2000_v14 = vadd.f32 %v4316_v41, %v1961_v25  ;;  %v4376_v31 = vmul.f32 %v2013_v3, %v3906_v63 }
 0x4c2   :  { %v2041_v27 = vadd.f32 %v2040_v54, %v4358_v17  ;;  %v2078_v57 = vadd.f32 %v2077_v55, %v2063_v9  ;;  %v1964_v23 = vadd.f32 %v3135_v7, %v3103_v38  ;;  %v1998_v61 = vadd.f32 %v4316_v41, %v1953_v20 }
 0x4c3   :  { %v4372_v28 = vmul.f32 %v2011_v58, %v3886_v53  ;;  %v1810_v52 = vpop.f32.mrf.mxu1  ;;  %v2016_v59 = vmax.f32 %v2000_v14, 0.0  ;;  %v2067_v3 = vmul.f32 %v4376_v31, %v4376_v31 }
 0x4c4   :  { %v2079_v5 = vadd.f32 %v2078_v57, %v2064_v49  ;;  %v1956_v22 = vadd.f32 %v1955_v30, %v1810_v52  ;;  %v2014_v11 = vmax.f32 %v1998_v61, 0.0  ;;  %v2001_v13 = vadd.f32 %v4316_v41, %v1964_v23  ;;  %v1971_v52 = vpop.f32.mrf.mxu0 }
 0x4c5   :  { %v2042_v24 = vadd.f32 %v2041_v27, %v4372_v28  ;;  %v2065_v7 = vmul.f32 %v4372_v28, %v4372_v28  ;;  %v3106_v47 = vpop.f32.mrf.mxu1  ;;  %v4393_v38 = vmul.f32 %v2016_v59, %v3947_v19 }
 0x4c6   :  { %v1999_v15 = vadd.f32 %v4316_v41, %v1956_v22  ;;  %v1977_v4 = vadd.f32 %v3138_v12, %v3106_v47  ;;  %v4387_v30 = vmul.f32 %v2014_v11, %v3929_v10  ;;  %v2017_v12 = vmax.f32 %v2001_v13, 0.0 }
 0x4c7   :  { %v2043_v18 = vadd.f32 %v2042_v24, %v4369_v44  ;;  %v2080_v25 = vadd.f32 %v2079_v5, %v2065_v7  ;;  %v1823_v9 = vpop.f32.mrf.mxu1 }
 0x4c8   :  { %v2015_v55 = vmax.f32 %v1999_v15, 0.0  ;;  %v1969_v54 = vadd.f32 %v1968_v32, %v1823_v9  ;;  %v2004_v57 = vadd.f32 %v4316_v41, %v1977_v4  ;;  %v2068_v61 = vmul.f32 %v4387_v30, %v4387_v30 }
 0x4c9   :  { %v2081_v49 = vadd.f32 %v2080_v25, %v2066_v6  ;;  %v2044_v58 = vadd.f32 %v2043_v18, %v4376_v31  ;;  %v3107_v20 = vpop.f32.mrf.mxu1  ;;  %v4406_v47 = vmul.f32 %v2017_v12, %v3942_v16  ;;  %v2070_v4 = vmul.f32 %v4393_v38, %v4393_v38 }
 0x4ca   :  { %v4396_v27 = vmul.f32 %v2015_v55, %v3924_v8  ;;  %v2002_v14 = vadd.f32 %v4316_v41, %v1969_v54  ;;  %v1980_v5 = vadd.f32 %v3139_v51, %v3107_v20  ;;  %v2020_v51 = vmax.f32 %v2004_v57, 0.0 }
 0x4cb   :  { %v2045_v23 = vadd.f32 %v2044_v58, %v4387_v30  ;;  %v2082_v32 = vadd.f32 %v2081_v49, %v2067_v3  ;;  %v1826_v22 = vpop.f32.mrf.mxu1  ;;  %v2071_v54 = vmul.f32 %v4406_v47, %v4406_v47 }
 0x4cc   :  { %v2069_v24 = vmul.f32 %v4396_v27, %v4396_v27  ;;  %v2018_v7 = vmax.f32 %v2002_v14, 0.0  ;;  %v1972_v11 = vadd.f32 %v1971_v52, %v1826_v22  ;;  %v2005_v15 = vadd.f32 %v4316_v41, %v1980_v5 }
 0x4cd   :  { %v2083_v13 = vadd.f32 %v2082_v32, %v2068_v61  ;;  %v2046_v59 = vadd.f32 %v2045_v23, %v4396_v27  ;;  %v4422_v20 = vmul.f32 %v2020_v51, %v3979_v42 }
 0x4ce   :  { %v2003_v6 = vadd.f32 %v4316_v41, %v1972_v11  ;;  %v4415_v9 = vmul.f32 %v2018_v7, %v3965_v36  ;;  %v2021_v58 = vmax.f32 %v2005_v15, 0.0 }
 0x4cf   :  { %v2047_v18 = vadd.f32 %v2046_v59, %v4393_v38  ;;  %v2084_v25 = vadd.f32 %v2083_v13, %v2069_v24  ;;  %v2074_v5 = vmul.f32 %v4422_v20, %v4422_v20 }
 0x4d0   :  { %v2019_v55 = vmax.f32 %v2003_v6, 0.0  ;;  %v2072_v57 = vmul.f32 %v4415_v9, %v4415_v9  ;;  %v4428_v32 = vmul.f32 %v2021_v58, %v3974_v29 }
 0x4d1   :  { %v2085_v3 = vadd.f32 %v2084_v25, %v2070_v4  ;;  %v2048_v49 = vadd.f32 %v2047_v18, %v4406_v47 }
 0x4d2   :  { %v2035_v12 = vmul.f32 %v2019_v55, %v3960_v34  ;;  %v2075_v7 = vmul.f32 %v4428_v32, %v4428_v32 }
 0x4d3   :  { %v2049_v41 = vadd.f32 %v2048_v49, %v4415_v9  ;;  %v2086_v14 = vadd.f32 %v2085_v3, %v2071_v54 }
 0x4d4   :  { %v2073_v23 = vmul.f32 %v2035_v12, %v2035_v12 }
 0x4d5   :  { %v2087_v61 = vadd.f32 %v2086_v14, %v2072_v57  ;;  %v2050_v52 = vadd.f32 %v2049_v41, %v2035_v12 }
 0x4d7   :  { %v2051_v22 = vadd.f32 %v2050_v52, %v4422_v20  ;;  %v2088_v24 = vadd.f32 %v2087_v61, %v2073_v23 }
 0x4d9   :  { %v2052_v11 = vadd.f32 %v2051_v22, %v4428_v32  ;;  %v2089_v13 = vadd.f32 %v2088_v24, %v2074_v5  ;;  %v2101_v5 = vld [vmem:[%s4592_s13] sm:$0x1] }
 0x4db   :  { %v2053_v59 = vrot.slane %v2052_v11, 4  ;;  %v2090_v15 = vadd.f32 %v2089_v13, %v2075_v7 }
 0x4dd   :  { %v2054_v4 = vadd.f32 %v2053_v59, %v2052_v11  ;;  %v2091_v6 = vrot.slane %v2090_v15, 4  ;;  %v2105_v11 = vld [vmem:[%s4593_s14] sm:$0x1] }
 0x4df   :  { %v2055_v18 = vrot.slane %v2054_v4, 2  ;;  %v2092_v25 = vadd.f32 %v2091_v6, %v2090_v15 }
 0x4e1   :  { %v2056_v51 = vadd.f32 %v2055_v18, %v2054_v4  ;;  %v2093_v55 = vrot.slane %v2092_v25, 2 }
 0x4e3   :  { %v2057_v54 = vrot.slane %v2056_v51, 1  ;;  %v2094_v3 = vadd.f32 %v2093_v55, %v2092_v25 }
 0x4e5   :  { %v2058_v49 = vadd.f32 %v2057_v54, %v2056_v51  ;;  %v2095_v58 = vrot.slane %v2094_v3, 1 }
 0x4e7   :  { %v2059_v41 = vmul.f32 0.010416667, %v2058_v49  ;;  %v2096_v57 = vadd.f32 %v2095_v58, %v2094_v3 }
 0x4e9   :  { %v2097_v14 = vmul.f32 0.010416667, %v2096_v57  ;;  %v2098_v23 = vmul.f32 %v2059_v41, %v2059_v41 }
 0x4eb   :  { %v2099_v61 = vsub.f32 %v2097_v14, %v2098_v23 }
 0x4ed   :  { %v2100_v52 = vmax.f32 %v2099_v61, 0.0 }
 0x4ef   :  { %v2102_v22 = vadd.f32 1e-05, %v2100_v52 }
 0x4f1   :  { %3308 = vrsqrt.f32 %v2102_v22 }
 0x4fe   :  { %v3309_v24 = vpop.eup %3308 }
 0x4ff   :  { %v2104_v7 = vmul.f32 %v3309_v24, %v2101_v5  ;;  %v4639_v5 = vld [vmem:[#allocation23_spill] sm:$0xff] }
 0x501   :  { %v2106_v13 = vmul.f32 %v2104_v7, %v2059_v41  ;;  %v4443_v59 = vrot.slane %v2104_v7, %v3831_v21  ;;  %v4640_v7 = vld [vmem:[#allocation24_spill] sm:$0xff] }
 0x503   :  { %v2107_v15 = vsub.f32 %v2105_v11, %v2106_v13  ;;  %v2127_v4 = vmul.f32 %v4443_v59, %v2035_v12  ;;  %v2114_v6 = vmul.f32 %v4443_v59, %v4331_v0  ;;  %v2115_v18 = vmul.f32 %v4443_v59, %v4339_v1  ;;  %v4641_v13 = vld [vmem:[#allocation26_spill] sm:$0xff] }
 0x504   :  { %v2116_v25 = vmul.f32 %v4443_v59, %v4336_v62  ;;  %v2117_v55 = vmul.f32 %v4443_v59, %v4345_v39  ;;  %v2118_v54 = vmul.f32 %v4443_v59, %v4358_v17  ;;  %v2119_v12 = vmul.f32 %v4443_v59, %v4372_v28 }
 0x505   :  { %v4453_v51 = vrot.slane %v2107_v15, %v3831_v21  ;;  %v2120_v0 = vmul.f32 %v4443_v59, %v4369_v44  ;;  %v2121_v1 = vmul.f32 %v4443_v59, %v4376_v31  ;;  %v2122_v62 = vmul.f32 %v4443_v59, %v4387_v30 }
 0x506   :  { %v2123_v21 = vmul.f32 %v4443_v59, %v4396_v27  ;;  %v2124_v30 = vmul.f32 %v4443_v59, %v4393_v38  ;;  %v2125_v52 = vmul.f32 %v4443_v59, %v4406_v47 }
 0x507   :  { %v2136_v39 = vadd.f32 %v4453_v51, %v2114_v6  ;;  %v2137_v3 = vadd.f32 %v4453_v51, %v2115_v18  ;;  %v2138_v17 = vadd.f32 %v4453_v51, %v2116_v25  ;;  %v2139_v28 = vadd.f32 %v4453_v51, %v2117_v55  ;;  %v4642_v6 = vld [vmem:[#allocation25_spill] sm:$0xff] }
 0x508   :  { %v2140_v49 = vadd.f32 %v4453_v51, %v2118_v54  ;;  %v2141_v44 = vadd.f32 %v4453_v51, %v2119_v12  ;;  %v2142_v31 = vadd.f32 %v4453_v51, %v2120_v0  ;;  %v2143_v61 = vadd.f32 %v4453_v51, %v2121_v1 }
 0x509   :  { %v2152_v58 = vmul.f32 %v2136_v39, %v3853_v40  ;;  %v2153_v27 = vmul.f32 %v2137_v3, %v3870_v46  ;;  %v2154_v41 = vmul.f32 %v2138_v17, %v3850_v37  ;;  %v2155_v57 = vmul.f32 %v2139_v28, %v3862_v43 }
 0x50a   :  { %v2156_v14 = vmul.f32 %v2140_v49, %v3893_v56  ;;  %v2157_v23 = vmul.f32 %v2141_v44, %v3886_v53  ;;  %v2158_v25 = vmul.f32 %v2142_v31, %v3911_v2  ;;  %v2126_v55 = vmul.f32 %v4443_v59, %v4415_v9  ;;  %v4643_v49 = vld [vmem:[#allocation30_spill] sm:$0xff]  ;;  %v4644_v31 = vld [vmem:[#allocation29_spill] sm:$0xff] }
 0x50b   :  { %v2168_v22 = vadd.f32 %v2152_v58, %v3876_v48  ;;  %v2169_v38 = vadd.f32 %v2153_v27, %v3879_v33  ;;  %v2170_v24 = vadd.f32 %v2154_v41, %v4639_v5  ;;  %v2171_v11 = vadd.f32 %v2155_v57, %v4640_v7  ;;  %v4645_v41 = vld [vmem:[#allocation28_spill] sm:$0xff]  ;;  %v4649_v5 = vld [vmem:[#allocation34_spill] sm:$0xff]  ;;  %v4650_v7 = vld [vmem:[#allocation33_spill] sm:$0xff] }
 0x50c   :  { %v2172_v15 = vadd.f32 %v2156_v14, %v4641_v13  ;;  %v2173_v18 = vadd.f32 %v2157_v23, %v4642_v6  ;;  %v2144_v47 = vadd.f32 %v4453_v51, %v2122_v62  ;;  %v2145_v48 = vadd.f32 %v4453_v51, %v2123_v21  ;;  %v4646_v14 = vld [vmem:[#allocation27_spill] sm:$0xff] }
 0x50d   :  { %v2184_v54 = vpack.c.bf16 %v2169_v38, %v2168_v22  ;;  %v2185_v12 = vpack.c.bf16 %v2171_v11, %v2170_v24  ;;  %v2159_v0 = vmul.f32 %v2143_v61, %v3906_v63  ;;  %v2146_v1 = vadd.f32 %v4453_v51, %v2124_v30  ;;  %v4647_v61 = vld [vmem:[#allocation32_spill] sm:$0xff] }
 0x50e   :  { %v2186_v33 = vpack.c.bf16 %v2173_v18, %v2172_v15  ;;  %v2147_v39 = vadd.f32 %v4453_v51, %v2125_v52  ;;  %v2160_v3 = vmul.f32 %v2144_v47, %v3929_v10  ;;  %v2161_v17 = vmul.f32 %v2145_v48, %v3924_v8  ;;  %v4648_v52 = vld [vmem:[#allocation31_spill] sm:$0xff]  ;;  %v3306_v47 = vld [vmem:[#allocation12 + $0x8] sm:$0xff]  }
 0x50f   :  { %3156 = vmatprep.mubr.bf16.mxu1 %v2184_v54  ;;  %v2148_v9 = vadd.f32 %v4453_v51, %v2126_v55  ;;  %v2149_v28 = vadd.f32 %v4453_v51, %v2127_v4  ;;  %v2162_v62 = vmul.f32 %v2146_v1, %v3947_v19  ;;  %v2174_v57 = vadd.f32 %v2158_v25, %v4645_v41 }
 0x510   :  { %3157 = vmatmul.mubr.bf16.vlgmr.msra.gmra.mxu1 %v2185_v12  ;;  %v2163_v21 = vmul.f32 %v2147_v39, %v3942_v16  ;;  %v2176_v44 = vadd.f32 %v2160_v3, %v4643_v49  ;;  %v2177_v30 = vadd.f32 %v2161_v17, %v4644_v31  ;;  %v2175_v23 = vadd.f32 %v2159_v0, %v4646_v14 }
 0x511   :  { %3160 = vmatprep.mubr.bf16.mxu1 %v2186_v33  ;;  %v2164_v58 = vmul.f32 %v2148_v9, %v3965_v36  ;;  %v2165_v27 = vmul.f32 %v2149_v28, %v3960_v34  ;;  %v2178_v4 = vadd.f32 %v2162_v62, %v4647_v61  ;;  %3212 = vmatpush3.bf16.msra.mxu1 %v4303_v50 }
 0x512   :  { %v2179_v22 = vadd.f32 %v2163_v21, %v4648_v52  ;;  %v2188_v38 = vpack.c.bf16 %v2177_v30, %v2176_v44  ;;  %3205 = vmatprep.subr.bf16.mxu1 %v4305_v35  ;;  %v2187_v6 = vpack.c.bf16 %v2175_v23, %v2174_v57  ;;  %v2128_v18 = vmul.f32 %v4443_v59, %v4422_v20  ;;  %v4651_v20 = vld [vmem:[#allocation36_spill] sm:$0xff] }
 0x513   :  { %v2180_v24 = vadd.f32 %v2164_v58, %v4649_v5  ;;  %v2181_v11 = vadd.f32 %v2165_v27, %v4650_v7  ;;  %v2129_v50 = vmul.f32 %v4443_v59, %v4428_v32  ;;  %v4652_v59 = vld [vmem:[#allocation35_spill] sm:$0xff] }
 0x514   :  { %v2189_v13 = vpack.c.bf16 %v2179_v22, %v2178_v4  ;;  %v2150_v25 = vadd.f32 %v4453_v51, %v2128_v18 }
 0x515   :  { %v2190_v15 = vpack.c.bf16 %v2181_v11, %v2180_v24  ;;  %3213 = vmatpush3.bf16.msra.mxu1 %v4305_v35  ;;  %v2151_v55 = vadd.f32 %v4453_v51, %v2129_v50 }
 0x516   :  { %3206 = vmatprep.subr.bf16.mxu1 %v4311_v26  ;;  %v2166_v35 = vmul.f32 %v2150_v25, %v3979_v42 }
 0x517   :  { %v2167_v54 = vmul.f32 %v2151_v55, %v3974_v29 }
 0x518   :  { %3161 = vmatmul.mubr.bf16.gmra.mxu1 %v2187_v6  ;;  %v2182_v32 = vadd.f32 %v2166_v35, %v4651_v20 }
 0x519   :  { %3164 = vmatprep.mubr.bf16.mxu1 %v2188_v38  ;;  %3214 = vmatpush3.bf16.msra.mxu1 %v4311_v26  ;;  %v2183_v12 = vadd.f32 %v2167_v54, %v4652_v59  ;;  %v3305_v26 = vld [vmem:[#allocation12 + $0x10] sm:$0xff]  }
 0x51a   :  { %3207 = vmatprep.subr.bf16.mxu1 %v4320_v60  ;;  %3182 = vmatprep.subr.bf16.mxu0 %v3305_v26 }
 0x51b   :  { %v2191_v51 = vpack.c.bf16 %v2183_v12, %v2182_v32  ;;  %3183 = vmatpush3.bf16.msra.mxu0 %v3305_v26 }
 0x51c   :  { %3184 = vmatprep.subr.bf16.mxu0 %v3306_v47 }
 0x51d   :  { %3215 = vmatpush3.bf16.msra.mxu1 %v4320_v60  ;;  %v3307_v60 = vld [vmem:[#allocation12] sm:$0xff]  }
 0x51e   :  { %3208 = vmatprep.subr.bf16.mxu1 %v4327_v45 }
 0x51f   :  { %3185 = vmatpush3.bf16.msra.mxu0 %v3306_v47 }
 0x520   :  { %3165 = vmatmul.mubr.bf16.gmra.mxu1 %v2189_v13  ;;  %3186 = vmatprep.subr.bf16.mxu0 %v3307_v60 }
 0x521   :  { %3168 = vmatprep.mubr.bf16.mxu1 %v2190_v15  ;;  %3216 = vmatpush3.bf16.msra.mxu1 %v4327_v45  ;;  %v2722_v45 = vld [vmem:[%s4595_s16] ss:$0 sm:$0xff] }
 0x522   :  { %3209 = vmatprep.subr.bf16.mxu1 %v3305_v26 }
 0x523   :  { %3187 = vmatpush3.bf16.msra.mxu0 %v3307_v60 }
 0x525   :  { %3217 = vmatpush3.bf16.msra.mxu1 %v3305_v26 }
 0x526   :  { %3210 = vmatprep.subr.bf16.mxu1 %v3306_v47 }
 0x528   :  { %3169 = vmatmul.mubr.bf16.gmra.mxu1 %v2191_v51 }
 0x529   :  { %3218 = vmatpush3.bf16.msra.mxu1 %v3306_v47 }
 0x52a   :  { %3211 = vmatprep.subr.bf16.mxu1 %v3307_v60 }
 0x52d   :  { %3219 = vmatpush3.bf16.msra.mxu1 %v3307_v60 }
 0x5d0   :  { %v3158_v48 = vpop.f32.mrf.mxu1 }
 0x5d1   :  { %v2306_v3 = vadd.f32 %v3158_v48, %v2722_v45 }
 0x5d2   :  { %v2297_v33 = vpop.f32.mrf.mxu1 }
 0x5d3   :  { %v2298_v1 = vadd.f32 %v2722_v45, %v2297_v33  ;;  %v2362_v44 = vmax.f32 %v2306_v3, 0.0 }
 0x5d4   :  { %v3159_v0 = vpop.f32.mrf.mxu1 }
 0x5d5   :  { %v2309_v39 = vadd.f32 %v3159_v0, %v2722_v45  ;;  %v2360_v21 = vmax.f32 %v2298_v1, 0.0 }
 0x5d6   :  { %v2300_v17 = vpop.f32.mrf.mxu1 }
 0x5d7   :  { %v2301_v9 = vadd.f32 %v2722_v45, %v2300_v17  ;;  %v2363_v28 = vmax.f32 %v2309_v39, 0.0 }
 0x5d8   :  { %v3162_v62 = vpop.f32.mrf.mxu1 }
 0x5d9   :  { %v2361_v49 = vmax.f32 %v2301_v9, 0.0  ;;  %v2377_v58 = vpack.c.bf16 %v2363_v28, %v2362_v44  ;;  %v2322_v14 = vadd.f32 %v3162_v62, %v2722_v45  ;;  %v4542_v62 = vld [vmem:[%s4597_s18] ss:$0 sm:$0xff]  ;;  %s3429_s18 = smov [#allocation14]  }
 0x5da   :  { %v2313_v31 = vpop.f32.mrf.mxu1  ;;  %s2589_s10 = sshll.u32 %s3429_s18, 4  ;;  %s2590_s10 = int_to_ptr.vmem [resolvable:$true] %s2589_s10 }
 0x5db   :  { %v2376_v30 = vpack.c.bf16 %v2361_v49, %v2360_v21  ;;  %v2314_v41 = vadd.f32 %v2722_v45, %v2313_v31  ;;  %v2366_v5 = vmax.f32 %v2322_v14, 0.0  ;;  %s3390_s21 = scalar_lea.vmem %s2590_s10, 2048  ;;  %p3395_p7 = scmp.lt.s32.totalorder %s2590_s10, %s2590_s10 }
 0x5dc   :  { %v3163_v27 = vpop.f32.mrf.mxu1  ;;  %p3391_p6 = scmp.ne.s32.totalorder %s2590_s10, %s3390_s21  ;;  %p3396_p8 = scmp.lt.s32.totalorder %s3390_s21, %s3390_s21 }
 0x5dd   :  { %v2325_v57 = vadd.f32 %v3163_v27, %v2722_v45  ;;  %3188 = vmatprep.mubr.bf16.mxu0 %v2376_v30  ;;  %v2364_v22 = vmax.f32 %v2314_v41, 0.0 }
 0x5de   :  { %v2316_v23 = vpop.f32.mrf.mxu1  ;;  %3189 = vmatmul.mubr.bf16.vlgmr.msra.gmra.mxu0 %v2377_v58  ;;  %p3397_p9 = por %p3396_p8, %p3395_p7 }
 0x5df   :  { %v2317_v61 = vadd.f32 %v2722_v45, %v2316_v23  ;;  %v2367_v4 = vmax.f32 %v2325_v57, 0.0 }
 0x5e0   :  { %v3166_v52 = vpop.f32.mrf.mxu1  ;;  %p3398_p10 = pnand %p3397_p9, %p3391_p6 }
 0x5e1   :  { %v2365_v38 = vmax.f32 %v2317_v61, 0.0  ;;  %v2379_v11 = vpack.c.bf16 %v2367_v4, %v2366_v5  ;;  %v2338_v18 = vadd.f32 %v3166_v52, %v2722_v45 }
 0x5e2   :  { %v2329_v24 = vpop.f32.mrf.mxu1 }
 0x5e3   :  { %v2378_v7 = vpack.c.bf16 %v2365_v38, %v2364_v22  ;;  %v2330_v15 = vadd.f32 %v2722_v45, %v2329_v24  ;;  %v2370_v32 = vmax.f32 %v2338_v18, 0.0 }
 0x5e4   :  { %v3167_v13 = vpop.f32.mrf.mxu1 }
 0x5e5   :  { %v2341_v6 = vadd.f32 %v3167_v13, %v2722_v45  ;;  %3192 = vmatprep.mubr.bf16.mxu0 %v2378_v7  ;;  %v2368_v54 = vmax.f32 %v2330_v15, 0.0 }
 0x5e6   :  { %v2332_v50 = vpop.f32.mrf.mxu1  ;;  %3193 = vmatmul.mubr.bf16.gmra.mxu0 %v2379_v11 }
 0x5e7   :  { %v2333_v25 = vadd.f32 %v2722_v45, %v2332_v50  ;;  %v2371_v55 = vmax.f32 %v2341_v6, 0.0 }
 0x5e8   :  { %v3170_v35 = vpop.f32.mrf.mxu1 }
 0x5e9   :  { %v2369_v20 = vmax.f32 %v2333_v25, 0.0  ;;  %v2381_v51 = vpack.c.bf16 %v2371_v55, %v2370_v32  ;;  %v2354_v48 = vadd.f32 %v3170_v35, %v2722_v45 }
 0x5ea   :  { %v2345_v59 = vpop.f32.mrf.mxu1 }
 0x5eb   :  { %v2380_v12 = vpack.c.bf16 %v2369_v20, %v2368_v54  ;;  %v2346_v47 = vadd.f32 %v2722_v45, %v2345_v59  ;;  %v2374_v17 = vmax.f32 %v2354_v48, 0.0 }
 0x5ec   :  { %v3171_v26 = vpop.f32.mrf.mxu1 }
 0x5ed   :  { %v2357_v60 = vadd.f32 %v3171_v26, %v2722_v45  ;;  %3196 = vmatprep.mubr.bf16.mxu1 %v2380_v12  ;;  %v2372_v39 = vmax.f32 %v2346_v47, 0.0 }
 0x5ee   :  { %v2348_v33 = vpop.f32.mrf.mxu1  ;;  %3197 = vmatmul.mubr.bf16.vlgmr.msra.gmra.mxu1 %v2381_v51 }
 0x5ef   :  { %v2349_v0 = vadd.f32 %v2722_v45, %v2348_v33  ;;  %v2375_v1 = vmax.f32 %v2357_v60, 0.0 }
 0x5f1   :  { %v2373_v3 = vmax.f32 %v2349_v0, 0.0  ;;  %v2383_v28 = vpack.c.bf16 %v2375_v1, %v2374_v17 }
 0x5f3   :  { %v2382_v9 = vpack.c.bf16 %v2373_v3, %v2372_v39 }
 0x5f5   :  { %3200 = vmatprep.mubr.bf16.mxu1 %v2382_v9 }
 0x5f6   :  { %3201 = vmatmul.mubr.bf16.gmra.mxu1 %v2383_v28 }
 0x69e   :  { %v3190_v21 = vpop.f32.mrf.mxu0 }
 0x69f   :  { %v2498_v49 = vadd.f32 %v3190_v21, %v4542_v62 }
 0x6a0   :  { %v2489_v44 = vpop.f32.mrf.mxu0 }
 0x6a1   :  { %v2554_v31 = vmul.f32 %v2498_v49, %v3850_v37  ;;  %v2490_v45 = vadd.f32 %v4542_v62, %v2489_v44 }
 0x6a2   :  { %v3191_v30 = vpop.f32.mrf.mxu0 }
 0x6a3   :  { %2570 = vst [vmem:[#allocation14 + $0x10] sm:$0xff] %v2554_v31  ;;  %v2552_v58 = vmul.f32 %v2490_v45, %v3853_v40  ;;  %v2501_v27 = vadd.f32 %v3191_v30, %v4542_v62 }
 0x6a4   :  { %v2492_v41 = vpop.f32.mrf.mxu0 }
 0x6a5   :  { %2568 = vst [vmem:[#allocation14] sm:$0xff] %v2552_v58  ;;  %v2555_v57 = vmul.f32 %v2501_v27, %v3862_v43  ;;  %v2493_v14 = vadd.f32 %v4542_v62, %v2492_v41 }
 0x6a6   :  { %v3194_v23 = vpop.f32.mrf.mxu0 }
 0x6a7   :  { %2571 = vst [vmem:[#allocation14 + $0x18] sm:$0xff] %v2555_v57  ;;  %v2553_v61 = vmul.f32 %v2493_v14, %v3870_v46  ;;  %v2514_v37 = vadd.f32 %v3194_v23, %v4542_v62 }
 0x6a8   :  { %v2505_v4 = vpop.f32.mrf.mxu0 }
 0x6a9   :  { %2569 = vst [vmem:[#allocation14 + $0x8] sm:$0xff] %v2553_v61  ;;  %v2558_v52 = vmul.f32 %v2514_v37, %v3911_v2  ;;  %v2506_v40 = vadd.f32 %v4542_v62, %v2505_v4 }
 0x6aa   :  { %v3195_v22 = vpop.f32.mrf.mxu0 }
 0x6ab   :  { %2574 = vst [vmem:[#allocation14 + $0x30] sm:$0xff] %v2558_v52  ;;  %v2556_v38 = vmul.f32 %v2506_v40, %v3893_v56  ;;  %v2517_v43 = vadd.f32 %v3195_v22, %v4542_v62 }
 0x6ac   :  { %v2508_v5 = vpop.f32.mrf.mxu0 }
 0x6ad   :  { %2572 = vst [vmem:[#allocation14 + $0x20] sm:$0xff] %v2556_v38  ;;  %v2559_v24 = vmul.f32 %v2517_v43, %v3906_v63  ;;  %v2509_v46 = vadd.f32 %v4542_v62, %v2508_v5 }
 0x6ae   :  { %v3198_v7 = vpop.f32.mrf.mxu1 }
 0x6af   :  { %2575 = vst [vmem:[#allocation14 + $0x38] sm:$0xff] %v2559_v24  ;;  %v2557_v11 = vmul.f32 %v2509_v46, %v3886_v53  ;;  %v2530_v2 = vadd.f32 %v3198_v7, %v4542_v62 }
 0x6b0   :  { %v2521_v13 = vpop.f32.mrf.mxu1 }
 0x6b1   :  { %2573 = vst [vmem:[#allocation14 + $0x28] sm:$0xff] %v2557_v11  ;;  %v2562_v15 = vmul.f32 %v2530_v2, %v3947_v19  ;;  %v2522_v56 = vadd.f32 %v4542_v62, %v2521_v13 }
 0x6b2   :  { %v3199_v6 = vpop.f32.mrf.mxu1 }
 0x6b3   :  { %2578 = vst [vmem:[#allocation14 + $0x50] sm:$0xff] %v2562_v15  ;;  %v2560_v18 = vmul.f32 %v2522_v56, %v3929_v10  ;;  %v2533_v63 = vadd.f32 %v3199_v6, %v4542_v62 }
 0x6b4   :  { %v2524_v50 = vpop.f32.mrf.mxu1 }
 0x6b5   :  { %2576 = vst [vmem:[#allocation14 + $0x40] sm:$0xff] %v2560_v18  ;;  %v2563_v25 = vmul.f32 %v2533_v63, %v3942_v16  ;;  %v2525_v53 = vadd.f32 %v4542_v62, %v2524_v50 }
 0x6b6   :  { %v3202_v55 = vpop.f32.mrf.mxu1 }
 0x6b7   :  { %2579 = vst [vmem:[#allocation14 + $0x58] sm:$0xff] %v2563_v25  ;;  %v2561_v35 = vmul.f32 %v2525_v53, %v3924_v8  ;;  %v2546_v19 = vadd.f32 %v3202_v55, %v4542_v62 }
 0x6b8   :  { %v2537_v54 = vpop.f32.mrf.mxu1 }
 0x6b9   :  { %2577 = vst [vmem:[#allocation14 + $0x48] sm:$0xff] %v2561_v35  ;;  %v2566_v20 = vmul.f32 %v2546_v19, %v3979_v42  ;;  %v2538_v10 = vadd.f32 %v4542_v62, %v2537_v54 }
 0x6ba   :  { %v3203_v32 = vpop.f32.mrf.mxu1 }
 0x6bb   :  { %2582 = vst [vmem:[#allocation14 + $0x70] sm:$0xff] %v2566_v20  ;;  %v2564_v59 = vmul.f32 %v2538_v10, %v3965_v36  ;;  %v2549_v16 = vadd.f32 %v3203_v32, %v4542_v62 }
 0x6bc   :  { %v2540_v12 = vpop.f32.mrf.mxu1 }
 0x6bd   :  { %2580 = vst [vmem:[#allocation14 + $0x60] sm:$0xff] %v2564_v59  ;;  %v2567_v8 = vmul.f32 %v2549_v16, %v3974_v29  ;;  %v2541_v51 = vadd.f32 %v4542_v62, %v2540_v12 }
 0x6bf   :  { %2583 = vst [vmem:[#allocation14 + $0x78] sm:$0xff] %v2567_v8  ;;  %v2565_v26 = vmul.f32 %v2541_v51, %v3960_v34 }
 0x6c1   :  { %2581 = vst [vmem:[#allocation14 + $0x68] sm:$0xff] %v2565_v26 }
 0x6c2   :  { %3401 = shalt.err (!%p3398_p10)
}
 0x6c3   :  { %s3430_s1 = smov 128   ;;  %s3431_s23 = smov 8  }
 0x6c4   :  { %2595 = dma.vmem_to_hbm [thread:$0]  %s2590_s10, 2048, %s4598_s19, [#allocation8], %s3430_s1, %s3430_s1, %s3431_s23  }
 0x6c5   :  { %3420 = dma.done.wait [#allocation8], 2048  }
 0x6c6   :  { %3421 = vsyncadd [#allocation8], 4294965248 }
 0x6c7   :  { %2599 = vsyncpa [#allocation7], 1 }
 0x6c8   :  { %2600 = vsyncpa [#allocation10], 1 }
 0x6c9   :  { %2601 = vsyncpa [#allocation13], 1 }
 0x6ca   :  { %2602 = vsyncpa [#allocation8], 1 }
 0x6cb   :  { %2603 = vsyncmov [#allocation3] }
 0x6ce   :  { %s2604_s26 = vpop.sfrf %2603 }
 0x6cf   :  { %p2740_p11 = scmp.ne.s32.totalorder %s2604_s26, 0 }
 0x6d1   :  { %2608 = shalt.err (%p2740_p11)  }
 0x6d2   :  { %2610 = vsyncmov [#allocation3 + $0x1] }
 0x6d5   :  { %s2611_s27 = vpop.sfrf %2610 }
 0x6d6   :  { %p2741_p12 = scmp.ne.s32.totalorder %s2611_s27, 0 }
 0x6d8   :  { %2615 = shalt.err (%p2741_p12)  }

</bundles_post_ra>
